<compile_context>
chip_gen: v6e
topology: v6e:2x2x1
jax: 0.10.0
libtpu: 0.0.40
codegen_flags: <defaults>
</compile_context>

<pallas_src>
import math
import functools

import jax
import jax.numpy as jnp
from jax.experimental import pallas as pl
from jax.experimental.pallas import tpu as pltpu


# --------------------------- in-kernel helpers ------------------------------ #

def _layer_norm(x, g, beta):
    mu = jnp.mean(x, axis=-1, keepdims=True)
    var = jnp.mean((x - mu) ** 2, axis=-1, keepdims=True)
    return (x - mu) * jax.lax.rsqrt(var + 1e-5) * g + beta


def _res_block(x, g, beta, w1, b1, w2, b2, prenorm):
    # x + Linear2(ReLU(Linear1(maybe LayerNorm(x))))   (dropouts identity in eval)
    h = _layer_norm(x, g, beta) if prenorm else x
    h = jnp.maximum(jnp.dot(h, w1, preferred_element_type=jnp.float32) + b1, 0.0)
    h = jnp.dot(h, w2, preferred_element_type=jnp.float32) + b2
    return x + h


# ------------------------------ fused kernel ------------------------------- #

def _fused_kernel(*refs, n_q, n_ctx, prenorms0, n_blocks1):
    nb0 = len(prenorms0)
    i = 0
    xq_in_ref, cand_in_ref, cy_ref, lw_ref, lb_ref = refs[i:i + 5]; i += 5
    b0_refs = refs[i:i + 6 * nb0]; i += 6 * nb0
    mg_ref, mb_ref, kw_ref, kb_ref = refs[i:i + 4]; i += 4
    lew_ref, leb_ref, tw1_ref, tb1_ref, tw2_ref = refs[i:i + 5]; i += 5
    b1_refs = refs[i:i + 6 * n_blocks1]; i += 6 * n_blocks1
    hg_ref, hb_ref, hw_ref, hbias_ref = refs[i:i + 4]; i += 4
    o_ref = refs[i]

    # ---- shared encoder over the concatenated [B+N] rows ----
    z = jnp.concatenate([xq_in_ref[...], cand_in_ref[...]], axis=0)
    x = (jnp.dot(z, lw_ref[...], preferred_element_type=jnp.float32) + lb_ref[...])
    for j, pn in enumerate(prenorms0):
        g, beta, w1, bb1, w2, bb2 = (r[...] for r in b0_refs[6 * j:6 * j + 6])
        x = _res_block(x, g, beta, w1, bb1, w2, bb2, pn)
    k = (jnp.dot(_layer_norm(x, mg_ref[...], mb_ref[...]), kw_ref[...],
                 preferred_element_type=jnp.float32) + kb_ref[...])

    x_q = x[:n_q]                       # [B, D]
    k_q = k[:n_q]                       # [B, D]
    ck = k[n_q:]                        # [N, D]  (candidate keys, VMEM-resident)
    d_main = k_q.shape[1]
    n_cand = ck.shape[0]

    # ---- similarities = -(||q||^2 - 2 q.c + ||c||^2)  (reference's expanded form)
    qc = jax.lax.dot_general(k_q, ck, (((1,), (1,)), ((), ())),
                             preferred_element_type=jnp.float32)        # [B, N]
    q2 = jnp.sum(k_q * k_q, axis=-1, keepdims=True)                     # [B, 1]
    ones = jnp.ones((1, d_main), jnp.float32)
    c2 = jax.lax.dot_general(ones, ck * ck, (((1,), (1,)), ((), ())),
                             preferred_element_type=jnp.float32)        # [1, N]
    sims = 2.0 * qc - q2 - c2                                           # [B, N]

    # ---- fused in-kernel top-k + neighbor selection ----
    # TODO(synk): at TabR-scale candidate counts the per-step one-hot select is
    # O(B*C*N*D); a scalar-prefetch/DMA row gather across a call boundary would be
    # the right move there.  At small/medium N this keeps everything in one launch.
    cand_iota = jax.lax.broadcasted_iota(jnp.int32, (n_q, n_cand), 1)
    cy = cy_ref[...]                                                    # [1, N]
    neg_inf = jnp.float32(-jnp.inf)
    masked = sims
    diffs, sel_sims, sel_ys = [], [], []
    for _c in range(n_ctx):
        row_max = jnp.max(masked, axis=-1, keepdims=True)               # [B, 1]
        sel_idx = jnp.min(jnp.where(masked == row_max, cand_iota, n_cand),
                          axis=-1, keepdims=True)                       # [B, 1]
        onehot = cand_iota == sel_idx                                   # [B, N] bool
        onehot_f = onehot.astype(jnp.float32)
        sel_k = jnp.dot(onehot_f, ck, preferred_element_type=jnp.float32)  # [B, D]
        sel_y = jnp.sum(onehot_f * cy, axis=-1, keepdims=True)          # [B, 1]
        diffs.append(k_q - sel_k)
        sel_sims.append(row_max)
        sel_ys.append(sel_y)
        masked = jnp.where(onehot, neg_inf, masked)

    diff_flat = jnp.concatenate(diffs, axis=0)                          # [C*B, D]
    sims_sel = jnp.concatenate(sel_sims, axis=1)                        # [B, C]
    y_sel = jnp.concatenate(sel_ys, axis=0)                             # [C*B, 1]

    # ---- values = label_encoder_(y_i) + T(k - k_i) ----
    yemb = y_sel * lew_ref[...] + leb_ref[...]                          # [C*B, D]
    h = jnp.maximum(
        jnp.dot(diff_flat, tw1_ref[...], preferred_element_type=jnp.float32)
        + tb1_ref[...], 0.0)
    values = yemb + jnp.dot(h, tw2_ref[...], preferred_element_type=jnp.float32)

    # ---- probs = softmax(similarities of the selected context)  (dropout identity)
    m = jnp.max(sims_sel, axis=-1, keepdims=True)
    e = jnp.exp(sims_sel - m)
    inv = pl.reciprocal(jnp.sum(e, axis=-1, keepdims=True), approx=True)
    probs = e * inv                                                     # [B, C]

    # ---- context_x = sum_c probs[:, c] * values[c]  (VPU FMAs, no [B,C,D] relayout)
    ctx = jnp.zeros_like(x_q)
    for c in range(n_ctx):
        ctx = ctx + probs[:, c:c + 1] * values[c * n_q:(c + 1) * n_q, :]
    xq = x_q + ctx

    # ---- predictor residual blocks + head ----
    for j in range(n_blocks1):
        g, beta, w1, bb1, w2, bb2 = (r[...] for r in b1_refs[6 * j:6 * j + 6])
        xq = _res_block(xq, g, beta, w1, bb1, w2, bb2, True)
    hh = jnp.maximum(_layer_norm(xq, hg_ref[...], hb_ref[...]), 0.0)
    o_ref[...] = (jnp.dot(hh, hw_ref[...], preferred_element_type=jnp.float32)
                  + hbias_ref[...])


# ------------------------------ thin wrapper ------------------------------- #

def fused_forward_call(params, x_num, candidate_x_num, candidate_y_row, context_size):
    b = x_num.shape[0]
    prenorms0 = tuple(bool(blk['prenorm']) for blk in params['blocks0'])
    n_b1 = len(params['blocks1'])
    d_out = params['head_w'].shape[1]

    blk0_args, blk1_args = [], []
    for blk in params['blocks0']:
        blk0_args += [blk['g'], blk['beta'], blk['w1'], blk['b1'], blk['w2'], blk['b2']]
    for blk in params['blocks1']:
        blk1_args += [blk['g'], blk['beta'], blk['w1'], blk['b1'], blk['w2'], blk['b2']]

    args = [x_num, candidate_x_num, candidate_y_row,
            params['linear_w'], params['linear_b'],
            *blk0_args,
            params['mix_g'], params['mix_beta'], params['K_w'], params['K_b'],
            params['le_w'], params['le_b'],
            params['T_w1'], params['T_b1'], params['T_w2'],
            *blk1_args,
            params['head_g'], params['head_beta'],
            params['head_w'], params['head_b']]

    return pl.pallas_call(
        functools.partial(_fused_kernel, n_q=b, n_ctx=context_size,
                          prenorms0=prenorms0, n_blocks1=n_b1),
        out_shape=jax.ShapeDtypeStruct((b, d_out), jnp.float32),
        in_specs=[pl.BlockSpec(memory_space=pltpu.MemorySpace.VMEM)
                  for _ in range(len(args))],
        out_specs=pl.BlockSpec(memory_space=pltpu.MemorySpace.VMEM),
        # Explicit scoped-VMEM budget (headroom vs the 16 MiB v5e default; still
        # well under v7x's 64 MiB physical).  For TabR-scale candidate counts the
        # candidate dimension would additionally need a tiled grid.
        compiler_params=pltpu.CompilerParams(vmem_limit_bytes=32 * 1024 * 1024),
    )(*args)


# ------------------------------ model forward ------------------------------ #

def forward(params, x_num, candidate_x_num, candidate_y,
            group_x_num, group_y, context_size):
    del group_x_num, group_y  # dead class-group branch: the reference computes
    # encode(group), a 10-NN search and a gather whose result is never used and
    # does not affect the returned tensors (eval path); removed as pure waste.

    assert context_size <= candidate_x_num.shape[0]

    # TODO(synk): ordinal_compute.class_distance_compute is an external library
    # with no Pallas equivalent; class_loss / Ldt are returned as zeros and the
    # yw_dict relabelling of context_y is taken as the identity mapping.
    class_loss = jnp.zeros((), jnp.float32)
    ldt = jnp.zeros((), jnp.float32)

    cy_row = candidate_y.astype(jnp.float32).reshape(1, -1)
    # TODO(synk): faiss top-k has no direct equivalent; it is replaced by an exact
    # in-kernel iterative max+mask selection on the squared-L2 similarity matrix.
    out = fused_forward_call(params, x_num, candidate_x_num, cy_row, context_size)
    return out, class_loss, ldt


# ------------------------------ parameter init ----------------------------- #

def make_params(key, n_num, d_main, d_block, encoder_n_blocks, predictor_n_blocks,
                d_out):
    keys = iter(jax.random.split(key, 64))

    def lin(din, dout, bias=True):
        bound = 1.0 / math.sqrt(din)
        w = jax.random.uniform(next(keys), (din, dout), jnp.float32, -bound, bound)
        if bias:
            b = jax.random.uniform(next(keys), (1, dout), jnp.float32, -bound, bound)
        else:
            b = jnp.zeros((1, dout), jnp.float32)
        return w, b

    def block(prenorm):
        w1, b1 = lin(d_main, d_block)
        w2, b2 = lin(d_block, d_main)
        return dict(prenorm=prenorm,
                    g=jnp.ones((1, d_main), jnp.float32),
                    beta=jnp.zeros((1, d_main), jnp.float32),
                    w1=w1, b1=b1, w2=w2, b2=b2)

    p = {}
    p['linear_w'], p['linear_b'] = lin(n_num, d_main)
    p['blocks0'] = [block(i > 0) for i in range(encoder_n_blocks)]
    p['mix_g'] = jnp.ones((1, d_main), jnp.float32)
    p['mix_beta'] = jnp.zeros((1, d_main), jnp.float32)
    p['K_w'], p['K_b'] = lin(d_main, d_main)
    p['le_w'], p['le_b'] = lin(1, d_main)          # label_encoder_ : Linear(1, d_main)
    p['T_w1'], p['T_b1'] = lin(d_main, d_block)
    p['T_w2'], _ = lin(d_block, d_main, bias=False)
    p['blocks1'] = [block(True) for _ in range(predictor_n_blocks)]
    p['head_g'] = jnp.ones((1, d_main), jnp.float32)
    p['head_beta'] = jnp.zeros((1, d_main), jnp.float32)
    p['head_w'], p['head_b'] = lin(d_main, d_out)
    return p


# ----------------------------------- main ----------------------------------- #

if __name__ == "__main__":
    key = jax.random.PRNGKey(0)
    n_num, d_main, d_block = 8, 32, 64          # n_bin=0, no categorical features
    B, N, G = 8, 32, 16                         # batch / candidates / class-group rows
    context_size = 8

    kp, kx, kc, ky, kg, kgy = jax.random.split(key, 6)
    params = make_params(kp, n_num, d_main, d_block,
                         encoder_n_blocks=2, predictor_n_blocks=1, d_out=1)

    x_num = jax.random.normal(kx, (B, n_num), jnp.float32)
    candidate_x_num = jax.random.normal(kc, (N, n_num), jnp.float32)
    candidate_y = jax.random.normal(ky, (N,), jnp.float32)
    group_x_num = jax.random.normal(kg, (G, n_num), jnp.float32)     # data_classGroup[0]
    group_y = jax.random.normal(kgy, (G,), jnp.float32)              # data_classGroup[1]

    out, class_loss, ldt = forward(params, x_num, candidate_x_num, candidate_y,
                                   group_x_num, group_y, context_size)
    jax.block_until_ready(out)
    assert out.shape == (B, 1)
    print("KERNEL_OK")
</pallas_src>

<mosaic_0001>
module attributes {stable_mosaic.version = 11 : i64} {
  func.func @_fused_kernel(%arg0: memref<8x8xf32, #tpu.memory_space<vmem>>, %arg1: memref<32x8xf32, #tpu.memory_space<vmem>>, %arg2: memref<1x32xf32, #tpu.memory_space<vmem>>, %arg3: memref<8x32xf32, #tpu.memory_space<vmem>>, %arg4: memref<1x32xf32, #tpu.memory_space<vmem>>, %arg5: memref<1x32xf32, #tpu.memory_space<vmem>>, %arg6: memref<1x32xf32, #tpu.memory_space<vmem>>, %arg7: memref<32x64xf32, #tpu.memory_space<vmem>>, %arg8: memref<1x64xf32, #tpu.memory_space<vmem>>, %arg9: memref<64x32xf32, #tpu.memory_space<vmem>>, %arg10: memref<1x32xf32, #tpu.memory_space<vmem>>, %arg11: memref<1x32xf32, #tpu.memory_space<vmem>>, %arg12: memref<1x32xf32, #tpu.memory_space<vmem>>, %arg13: memref<32x64xf32, #tpu.memory_space<vmem>>, %arg14: memref<1x64xf32, #tpu.memory_space<vmem>>, %arg15: memref<64x32xf32, #tpu.memory_space<vmem>>, %arg16: memref<1x32xf32, #tpu.memory_space<vmem>>, %arg17: memref<1x32xf32, #tpu.memory_space<vmem>>, %arg18: memref<1x32xf32, #tpu.memory_space<vmem>>, %arg19: memref<32x32xf32, #tpu.memory_space<vmem>>, %arg20: memref<1x32xf32, #tpu.memory_space<vmem>>, %arg21: memref<1x32xf32, #tpu.memory_space<vmem>>, %arg22: memref<1x32xf32, #tpu.memory_space<vmem>>, %arg23: memref<32x64xf32, #tpu.memory_space<vmem>>, %arg24: memref<1x64xf32, #tpu.memory_space<vmem>>, %arg25: memref<64x32xf32, #tpu.memory_space<vmem>>, %arg26: memref<1x32xf32, #tpu.memory_space<vmem>>, %arg27: memref<1x32xf32, #tpu.memory_space<vmem>>, %arg28: memref<32x64xf32, #tpu.memory_space<vmem>>, %arg29: memref<1x64xf32, #tpu.memory_space<vmem>>, %arg30: memref<64x32xf32, #tpu.memory_space<vmem>>, %arg31: memref<1x32xf32, #tpu.memory_space<vmem>>, %arg32: memref<1x32xf32, #tpu.memory_space<vmem>>, %arg33: memref<1x32xf32, #tpu.memory_space<vmem>>, %arg34: memref<32x1xf32, #tpu.memory_space<vmem>>, %arg35: memref<1x1xf32, #tpu.memory_space<vmem>>, %arg36: memref<8x1xf32, #tpu.memory_space<vmem>>) attributes {dimension_semantics = [], scalar_prefetch = 0 : i64, scratch_operands = 0 : i64, tpu.core_type = #tpu.core_type<tc>} {
    %c0 = arith.constant 0 : index
    %c0_0 = arith.constant 0 : index
    %0 = vector.load %arg0[%c0, %c0_0] : memref<8x8xf32, #tpu.memory_space<vmem>>, vector<8x8xf32>
    %c0_1 = arith.constant 0 : index
    %c0_2 = arith.constant 0 : index
    %1 = vector.load %arg1[%c0_1, %c0_2] : memref<32x8xf32, #tpu.memory_space<vmem>>, vector<32x8xf32>
    %2 = tpu.concatenate %0, %1 in 0 : vector<8x8xf32>, vector<32x8xf32> -> vector<40x8xf32>
    %c0_3 = arith.constant 0 : index
    %c0_4 = arith.constant 0 : index
    %3 = vector.load %arg3[%c0_3, %c0_4] : memref<8x32xf32, #tpu.memory_space<vmem>>, vector<8x32xf32>
    %cst = arith.constant dense<0.000000e+00> : vector<40x32xf32>
    %4 = tpu.matmul %2, %3, %cst {dimension_numbers = #tpu.dot_dimension_numbers<[1], [0], [0], [1], [0, 0, 1, 1], [], []>} : vector<40x8xf32>, vector<8x32xf32>, vector<40x32xf32> -> vector<40x32xf32>
    %c0_5 = arith.constant 0 : index
    %c0_6 = arith.constant 0 : index
    %5 = vector.load %arg4[%c0_5, %c0_6] : memref<1x32xf32, #tpu.memory_space<vmem>>, vector<1x32xf32>
    %6 = vector.broadcast %5 : vector<1x32xf32> to vector<40x32xf32>
    %7 = arith.addf %4, %6 : vector<40x32xf32>
    %c0_7 = arith.constant 0 : index
    %c0_8 = arith.constant 0 : index
    %8 = vector.load %arg7[%c0_7, %c0_8] : memref<32x64xf32, #tpu.memory_space<vmem>>, vector<32x64xf32>
    %c0_9 = arith.constant 0 : index
    %c0_10 = arith.constant 0 : index
    %9 = vector.load %arg8[%c0_9, %c0_10] : memref<1x64xf32, #tpu.memory_space<vmem>>, vector<1x64xf32>
    %c0_11 = arith.constant 0 : index
    %c0_12 = arith.constant 0 : index
    %10 = vector.load %arg9[%c0_11, %c0_12] : memref<64x32xf32, #tpu.memory_space<vmem>>, vector<64x32xf32>
    %c0_13 = arith.constant 0 : index
    %c0_14 = arith.constant 0 : index
    %11 = vector.load %arg10[%c0_13, %c0_14] : memref<1x32xf32, #tpu.memory_space<vmem>>, vector<1x32xf32>
    %cst_15 = arith.constant dense<0.000000e+00> : vector<40x64xf32>
    %12 = tpu.matmul %7, %8, %cst_15 {dimension_numbers = #tpu.dot_dimension_numbers<[1], [0], [0], [1], [0, 0, 1, 1], [], []>} : vector<40x32xf32>, vector<32x64xf32>, vector<40x64xf32> -> vector<40x64xf32>
    %13 = vector.broadcast %9 : vector<1x64xf32> to vector<40x64xf32>
    %14 = arith.addf %12, %13 : vector<40x64xf32>
    %cst_16 = arith.constant 0.000000e+00 : f32
    %15 = vector.broadcast %cst_16 : f32 to vector<40x64xf32>
    %16 = arith.maximumf %14, %15 : vector<40x64xf32>
    %cst_17 = arith.constant dense<0.000000e+00> : vector<40x32xf32>
    %17 = tpu.matmul %16, %10, %cst_17 {dimension_numbers = #tpu.dot_dimension_numbers<[1], [0], [0], [1], [0, 0, 1, 1], [], []>} : vector<40x64xf32>, vector<64x32xf32>, vector<40x32xf32> -> vector<40x32xf32>
    %18 = vector.broadcast %11 : vector<1x32xf32> to vector<40x32xf32>
    %19 = arith.addf %17, %18 : vector<40x32xf32>
    %20 = arith.addf %7, %19 : vector<40x32xf32>
    %c0_18 = arith.constant 0 : index
    %c0_19 = arith.constant 0 : index
    %21 = vector.load %arg11[%c0_18, %c0_19] : memref<1x32xf32, #tpu.memory_space<vmem>>, vector<1x32xf32>
    %c0_20 = arith.constant 0 : index
    %c0_21 = arith.constant 0 : index
    %22 = vector.load %arg12[%c0_20, %c0_21] : memref<1x32xf32, #tpu.memory_space<vmem>>, vector<1x32xf32>
    %c0_22 = arith.constant 0 : index
    %c0_23 = arith.constant 0 : index
    %23 = vector.load %arg13[%c0_22, %c0_23] : memref<32x64xf32, #tpu.memory_space<vmem>>, vector<32x64xf32>
    %c0_24 = arith.constant 0 : index
    %c0_25 = arith.constant 0 : index
    %24 = vector.load %arg14[%c0_24, %c0_25] : memref<1x64xf32, #tpu.memory_space<vmem>>, vector<1x64xf32>
    %c0_26 = arith.constant 0 : index
    %c0_27 = arith.constant 0 : index
    %25 = vector.load %arg15[%c0_26, %c0_27] : memref<64x32xf32, #tpu.memory_space<vmem>>, vector<64x32xf32>
    %c0_28 = arith.constant 0 : index
    %c0_29 = arith.constant 0 : index
    %26 = vector.load %arg16[%c0_28, %c0_29] : memref<1x32xf32, #tpu.memory_space<vmem>>, vector<1x32xf32>
    %cst_30 = arith.constant dense<0.000000e+00> : vector<40xf32>
    %27 = vector.multi_reduction <add>, %20, %cst_30 [1] : vector<40x32xf32> to vector<40xf32>
    %28 = vector.shape_cast %27 : vector<40xf32> to vector<40x1xf32>
    %cst_31 = arith.constant 3.200000e+01 : f32
    %29 = vector.broadcast %cst_31 : f32 to vector<40x1xf32>
    %30 = arith.divf %28, %29 : vector<40x1xf32>
    %31 = vector.broadcast %30 : vector<40x1xf32> to vector<40x32xf32>
    %32 = arith.subf %20, %31 : vector<40x32xf32>
    %33 = arith.mulf %32, %32 : vector<40x32xf32>
    %cst_32 = arith.constant dense<0.000000e+00> : vector<40xf32>
    %34 = vector.multi_reduction <add>, %33, %cst_32 [1] : vector<40x32xf32> to vector<40xf32>
    %35 = vector.shape_cast %34 : vector<40xf32> to vector<40x1xf32>
    %cst_33 = arith.constant 3.200000e+01 : f32
    %36 = vector.broadcast %cst_33 : f32 to vector<40x1xf32>
    %37 = arith.divf %35, %36 : vector<40x1xf32>
    %38 = vector.broadcast %30 : vector<40x1xf32> to vector<40x32xf32>
    %39 = arith.subf %20, %38 : vector<40x32xf32>
    %cst_34 = arith.constant 9.99999974E-6 : f32
    %40 = vector.broadcast %cst_34 : f32 to vector<40x1xf32>
    %41 = arith.addf %37, %40 : vector<40x1xf32>
    %42 = math.rsqrt %41 : vector<40x1xf32>
    %43 = vector.broadcast %42 : vector<40x1xf32> to vector<40x32xf32>
    %44 = arith.mulf %39, %43 : vector<40x32xf32>
    %45 = vector.broadcast %21 : vector<1x32xf32> to vector<40x32xf32>
    %46 = arith.mulf %44, %45 : vector<40x32xf32>
    %47 = vector.broadcast %22 : vector<1x32xf32> to vector<40x32xf32>
    %48 = arith.addf %46, %47 : vector<40x32xf32>
    %cst_35 = arith.constant dense<0.000000e+00> : vector<40x64xf32>
    %49 = tpu.matmul %48, %23, %cst_35 {dimension_numbers = #tpu.dot_dimension_numbers<[1], [0], [0], [1], [0, 0, 1, 1], [], []>} : vector<40x32xf32>, vector<32x64xf32>, vector<40x64xf32> -> vector<40x64xf32>
    %50 = vector.broadcast %24 : vector<1x64xf32> to vector<40x64xf32>
    %51 = arith.addf %49, %50 : vector<40x64xf32>
    %cst_36 = arith.constant 0.000000e+00 : f32
    %52 = vector.broadcast %cst_36 : f32 to vector<40x64xf32>
    %53 = arith.maximumf %51, %52 : vector<40x64xf32>
    %cst_37 = arith.constant dense<0.000000e+00> : vector<40x32xf32>
    %54 = tpu.matmul %53, %25, %cst_37 {dimension_numbers = #tpu.dot_dimension_numbers<[1], [0], [0], [1], [0, 0, 1, 1], [], []>} : vector<40x64xf32>, vector<64x32xf32>, vector<40x32xf32> -> vector<40x32xf32>
    %55 = vector.broadcast %26 : vector<1x32xf32> to vector<40x32xf32>
    %56 = arith.addf %54, %55 : vector<40x32xf32>
    %57 = arith.addf %20, %56 : vector<40x32xf32>
    %c0_38 = arith.constant 0 : index
    %c0_39 = arith.constant 0 : index
    %58 = vector.load %arg17[%c0_38, %c0_39] : memref<1x32xf32, #tpu.memory_space<vmem>>, vector<1x32xf32>
    %c0_40 = arith.constant 0 : index
    %c0_41 = arith.constant 0 : index
    %59 = vector.load %arg18[%c0_40, %c0_41] : memref<1x32xf32, #tpu.memory_space<vmem>>, vector<1x32xf32>
    %cst_42 = arith.constant dense<0.000000e+00> : vector<40xf32>
    %60 = vector.multi_reduction <add>, %57, %cst_42 [1] : vector<40x32xf32> to vector<40xf32>
    %61 = vector.shape_cast %60 : vector<40xf32> to vector<40x1xf32>
    %cst_43 = arith.constant 3.200000e+01 : f32
    %62 = vector.broadcast %cst_43 : f32 to vector<40x1xf32>
    %63 = arith.divf %61, %62 : vector<40x1xf32>
    %64 = vector.broadcast %63 : vector<40x1xf32> to vector<40x32xf32>
    %65 = arith.subf %57, %64 : vector<40x32xf32>
    %66 = arith.mulf %65, %65 : vector<40x32xf32>
    %cst_44 = arith.constant dense<0.000000e+00> : vector<40xf32>
    %67 = vector.multi_reduction <add>, %66, %cst_44 [1] : vector<40x32xf32> to vector<40xf32>
    %68 = vector.shape_cast %67 : vector<40xf32> to vector<40x1xf32>
    %cst_45 = arith.constant 3.200000e+01 : f32
    %69 = vector.broadcast %cst_45 : f32 to vector<40x1xf32>
    %70 = arith.divf %68, %69 : vector<40x1xf32>
    %71 = vector.broadcast %63 : vector<40x1xf32> to vector<40x32xf32>
    %72 = arith.subf %57, %71 : vector<40x32xf32>
    %cst_46 = arith.constant 9.99999974E-6 : f32
    %73 = vector.broadcast %cst_46 : f32 to vector<40x1xf32>
    %74 = arith.addf %70, %73 : vector<40x1xf32>
    %75 = math.rsqrt %74 : vector<40x1xf32>
    %76 = vector.broadcast %75 : vector<40x1xf32> to vector<40x32xf32>
    %77 = arith.mulf %72, %76 : vector<40x32xf32>
    %78 = vector.broadcast %58 : vector<1x32xf32> to vector<40x32xf32>
    %79 = arith.mulf %77, %78 : vector<40x32xf32>
    %80 = vector.broadcast %59 : vector<1x32xf32> to vector<40x32xf32>
    %81 = arith.addf %79, %80 : vector<40x32xf32>
    %c0_47 = arith.constant 0 : index
    %c0_48 = arith.constant 0 : index
    %82 = vector.load %arg19[%c0_47, %c0_48] : memref<32x32xf32, #tpu.memory_space<vmem>>, vector<32x32xf32>
    %cst_49 = arith.constant dense<0.000000e+00> : vector<40x32xf32>
    %83 = tpu.matmul %81, %82, %cst_49 {dimension_numbers = #tpu.dot_dimension_numbers<[1], [0], [0], [1], [0, 0, 1, 1], [], []>} : vector<40x32xf32>, vector<32x32xf32>, vector<40x32xf32> -> vector<40x32xf32>
    %c0_50 = arith.constant 0 : index
    %c0_51 = arith.constant 0 : index
    %84 = vector.load %arg20[%c0_50, %c0_51] : memref<1x32xf32, #tpu.memory_space<vmem>>, vector<1x32xf32>
    %85 = vector.broadcast %84 : vector<1x32xf32> to vector<40x32xf32>
    %86 = arith.addf %83, %85 : vector<40x32xf32>
    %87 = vector.extract_strided_slice %57 {offsets = [0, 0], sizes = [8, 32], strides = [1, 1]} : vector<40x32xf32> to vector<8x32xf32>
    %88 = vector.extract_strided_slice %86 {offsets = [0, 0], sizes = [8, 32], strides = [1, 1]} : vector<40x32xf32> to vector<8x32xf32>
    %89 = vector.extract_strided_slice %86 {offsets = [8, 0], sizes = [32, 32], strides = [1, 1]} : vector<40x32xf32> to vector<32x32xf32>
    %cst_52 = arith.constant dense<0.000000e+00> : vector<8x32xf32>
    %90 = tpu.matmul %88, %89, %cst_52 {dimension_numbers = #tpu.dot_dimension_numbers<[1], [1], [0], [0], [0, 0, 1, 0], [], []>} : vector<8x32xf32>, vector<32x32xf32>, vector<8x32xf32> -> vector<8x32xf32>
    %91 = arith.mulf %88, %88 : vector<8x32xf32>
    %cst_53 = arith.constant dense<0.000000e+00> : vector<8xf32>
    %92 = vector.multi_reduction <add>, %91, %cst_53 [1] : vector<8x32xf32> to vector<8xf32>
    %93 = vector.shape_cast %92 : vector<8xf32> to vector<8x1xf32>
    %cst_54 = arith.constant 1.000000e+00 : f32
    %94 = vector.broadcast %cst_54 : f32 to vector<1x32xf32>
    %95 = arith.mulf %89, %89 : vector<32x32xf32>
    %cst_55 = arith.constant dense<0.000000e+00> : vector<1x32xf32>
    %96 = tpu.matmul %94, %95, %cst_55 {dimension_numbers = #tpu.dot_dimension_numbers<[1], [1], [0], [0], [0, 0, 1, 0], [], []>} : vector<1x32xf32>, vector<32x32xf32>, vector<1x32xf32> -> vector<1x32xf32>
    %cst_56 = arith.constant 2.000000e+00 : f32
    %97 = vector.broadcast %cst_56 : f32 to vector<8x32xf32>
    %98 = arith.mulf %97, %90 : vector<8x32xf32>
    %99 = vector.broadcast %93 : vector<8x1xf32> to vector<8x32xf32>
    %100 = arith.subf %98, %99 : vector<8x32xf32>
    %101 = vector.broadcast %96 : vector<1x32xf32> to vector<8x32xf32>
    %102 = arith.subf %100, %101 : vector<8x32xf32>
    %103 = tpu.iota {dimensions = array<i32: 1>} : vector<8x32xi32>
    %c0_57 = arith.constant 0 : index
    %c0_58 = arith.constant 0 : index
    %104 = vector.load %arg2[%c0_57, %c0_58] : memref<1x32xf32, #tpu.memory_space<vmem>>, vector<1x32xf32>
    %cst_59 = arith.constant dense<0xFF800000> : vector<8xf32>
    %105 = vector.multi_reduction <maximumf>, %102, %cst_59 [1] : vector<8x32xf32> to vector<8xf32>
    %106 = vector.shape_cast %105 : vector<8xf32> to vector<8x1xf32>
    %107 = vector.broadcast %106 : vector<8x1xf32> to vector<8x32xf32>
    %108 = arith.cmpf oeq, %102, %107 : vector<8x32xf32>
    %c32_i32 = arith.constant 32 : i32
    %109 = vector.broadcast %c32_i32 : i32 to vector<8x32xi32>
    %110 = arith.select %108, %103, %109 : vector<8x32xi1>, vector<8x32xi32>
    %cst_60 = arith.constant dense<2147483647> : vector<8xi32>
    %111 = vector.multi_reduction <minsi>, %110, %cst_60 [1] : vector<8x32xi32> to vector<8xi32>
    %112 = vector.shape_cast %111 : vector<8xi32> to vector<8x1xi32>
    %113 = vector.broadcast %112 : vector<8x1xi32> to vector<8x32xi32>
    %114 = arith.cmpi eq, %103, %113 : vector<8x32xi32>
    %115 = arith.extui %114 : vector<8x32xi1> to vector<8x32xi32>
    %116 = arith.sitofp %115 : vector<8x32xi32> to vector<8x32xf32>
    %cst_61 = arith.constant dense<0.000000e+00> : vector<8x32xf32>
    %117 = tpu.matmul %116, %89, %cst_61 {dimension_numbers = #tpu.dot_dimension_numbers<[1], [0], [0], [1], [0, 0, 1, 1], [], []>} : vector<8x32xf32>, vector<32x32xf32>, vector<8x32xf32> -> vector<8x32xf32>
    %118 = vector.broadcast %104 : vector<1x32xf32> to vector<8x32xf32>
    %119 = arith.mulf %116, %118 : vector<8x32xf32>
    %cst_62 = arith.constant dense<0.000000e+00> : vector<8xf32>
    %120 = vector.multi_reduction <add>, %119, %cst_62 [1] : vector<8x32xf32> to vector<8xf32>
    %121 = vector.shape_cast %120 : vector<8xf32> to vector<8x1xf32>
    %122 = arith.subf %88, %117 : vector<8x32xf32>
    %cst_63 = arith.constant 0xFF800000 : f32
    %123 = vector.broadcast %cst_63 : f32 to vector<8x32xf32>
    %124 = arith.select %114, %123, %102 : vector<8x32xi1>, vector<8x32xf32>
    %cst_64 = arith.constant dense<0xFF800000> : vector<8xf32>
    %125 = vector.multi_reduction <maximumf>, %124, %cst_64 [1] : vector<8x32xf32> to vector<8xf32>
    %126 = vector.shape_cast %125 : vector<8xf32> to vector<8x1xf32>
    %127 = vector.broadcast %126 : vector<8x1xf32> to vector<8x32xf32>
    %128 = arith.cmpf oeq, %124, %127 : vector<8x32xf32>
    %c32_i32_65 = arith.constant 32 : i32
    %129 = vector.broadcast %c32_i32_65 : i32 to vector<8x32xi32>
    %130 = arith.select %128, %103, %129 : vector<8x32xi1>, vector<8x32xi32>
    %cst_66 = arith.constant dense<2147483647> : vector<8xi32>
    %131 = vector.multi_reduction <minsi>, %130, %cst_66 [1] : vector<8x32xi32> to vector<8xi32>
    %132 = vector.shape_cast %131 : vector<8xi32> to vector<8x1xi32>
    %133 = vector.broadcast %132 : vector<8x1xi32> to vector<8x32xi32>
    %134 = arith.cmpi eq, %103, %133 : vector<8x32xi32>
    %135 = arith.extui %134 : vector<8x32xi1> to vector<8x32xi32>
    %136 = arith.sitofp %135 : vector<8x32xi32> to vector<8x32xf32>
    %cst_67 = arith.constant dense<0.000000e+00> : vector<8x32xf32>
    %137 = tpu.matmul %136, %89, %cst_67 {dimension_numbers = #tpu.dot_dimension_numbers<[1], [0], [0], [1], [0, 0, 1, 1], [], []>} : vector<8x32xf32>, vector<32x32xf32>, vector<8x32xf32> -> vector<8x32xf32>
    %138 = vector.broadcast %104 : vector<1x32xf32> to vector<8x32xf32>
    %139 = arith.mulf %136, %138 : vector<8x32xf32>
    %cst_68 = arith.constant dense<0.000000e+00> : vector<8xf32>
    %140 = vector.multi_reduction <add>, %139, %cst_68 [1] : vector<8x32xf32> to vector<8xf32>
    %141 = vector.shape_cast %140 : vector<8xf32> to vector<8x1xf32>
    %142 = arith.subf %88, %137 : vector<8x32xf32>
    %cst_69 = arith.constant 0xFF800000 : f32
    %143 = vector.broadcast %cst_69 : f32 to vector<8x32xf32>
    %144 = arith.select %134, %143, %124 : vector<8x32xi1>, vector<8x32xf32>
    %cst_70 = arith.constant dense<0xFF800000> : vector<8xf32>
    %145 = vector.multi_reduction <maximumf>, %144, %cst_70 [1] : vector<8x32xf32> to vector<8xf32>
    %146 = vector.shape_cast %145 : vector<8xf32> to vector<8x1xf32>
    %147 = vector.broadcast %146 : vector<8x1xf32> to vector<8x32xf32>
    %148 = arith.cmpf oeq, %144, %147 : vector<8x32xf32>
    %c32_i32_71 = arith.constant 32 : i32
    %149 = vector.broadcast %c32_i32_71 : i32 to vector<8x32xi32>
    %150 = arith.select %148, %103, %149 : vector<8x32xi1>, vector<8x32xi32>
    %cst_72 = arith.constant dense<2147483647> : vector<8xi32>
    %151 = vector.multi_reduction <minsi>, %150, %cst_72 [1] : vector<8x32xi32> to vector<8xi32>
    %152 = vector.shape_cast %151 : vector<8xi32> to vector<8x1xi32>
    %153 = vector.broadcast %152 : vector<8x1xi32> to vector<8x32xi32>
    %154 = arith.cmpi eq, %103, %153 : vector<8x32xi32>
    %155 = arith.extui %154 : vector<8x32xi1> to vector<8x32xi32>
    %156 = arith.sitofp %155 : vector<8x32xi32> to vector<8x32xf32>
    %cst_73 = arith.constant dense<0.000000e+00> : vector<8x32xf32>
    %157 = tpu.matmul %156, %89, %cst_73 {dimension_numbers = #tpu.dot_dimension_numbers<[1], [0], [0], [1], [0, 0, 1, 1], [], []>} : vector<8x32xf32>, vector<32x32xf32>, vector<8x32xf32> -> vector<8x32xf32>
    %158 = vector.broadcast %104 : vector<1x32xf32> to vector<8x32xf32>
    %159 = arith.mulf %156, %158 : vector<8x32xf32>
    %cst_74 = arith.constant dense<0.000000e+00> : vector<8xf32>
    %160 = vector.multi_reduction <add>, %159, %cst_74 [1] : vector<8x32xf32> to vector<8xf32>
    %161 = vector.shape_cast %160 : vector<8xf32> to vector<8x1xf32>
    %162 = arith.subf %88, %157 : vector<8x32xf32>
    %cst_75 = arith.constant 0xFF800000 : f32
    %163 = vector.broadcast %cst_75 : f32 to vector<8x32xf32>
    %164 = arith.select %154, %163, %144 : vector<8x32xi1>, vector<8x32xf32>
    %cst_76 = arith.constant dense<0xFF800000> : vector<8xf32>
    %165 = vector.multi_reduction <maximumf>, %164, %cst_76 [1] : vector<8x32xf32> to vector<8xf32>
    %166 = vector.shape_cast %165 : vector<8xf32> to vector<8x1xf32>
    %167 = vector.broadcast %166 : vector<8x1xf32> to vector<8x32xf32>
    %168 = arith.cmpf oeq, %164, %167 : vector<8x32xf32>
    %c32_i32_77 = arith.constant 32 : i32
    %169 = vector.broadcast %c32_i32_77 : i32 to vector<8x32xi32>
    %170 = arith.select %168, %103, %169 : vector<8x32xi1>, vector<8x32xi32>
    %cst_78 = arith.constant dense<2147483647> : vector<8xi32>
    %171 = vector.multi_reduction <minsi>, %170, %cst_78 [1] : vector<8x32xi32> to vector<8xi32>
    %172 = vector.shape_cast %171 : vector<8xi32> to vector<8x1xi32>
    %173 = vector.broadcast %172 : vector<8x1xi32> to vector<8x32xi32>
    %174 = arith.cmpi eq, %103, %173 : vector<8x32xi32>
    %175 = arith.extui %174 : vector<8x32xi1> to vector<8x32xi32>
    %176 = arith.sitofp %175 : vector<8x32xi32> to vector<8x32xf32>
    %cst_79 = arith.constant dense<0.000000e+00> : vector<8x32xf32>
    %177 = tpu.matmul %176, %89, %cst_79 {dimension_numbers = #tpu.dot_dimension_numbers<[1], [0], [0], [1], [0, 0, 1, 1], [], []>} : vector<8x32xf32>, vector<32x32xf32>, vector<8x32xf32> -> vector<8x32xf32>
    %178 = vector.broadcast %104 : vector<1x32xf32> to vector<8x32xf32>
    %179 = arith.mulf %176, %178 : vector<8x32xf32>
    %cst_80 = arith.constant dense<0.000000e+00> : vector<8xf32>
    %180 = vector.multi_reduction <add>, %179, %cst_80 [1] : vector<8x32xf32> to vector<8xf32>
    %181 = vector.shape_cast %180 : vector<8xf32> to vector<8x1xf32>
    %182 = arith.subf %88, %177 : vector<8x32xf32>
    %cst_81 = arith.constant 0xFF800000 : f32
    %183 = vector.broadcast %cst_81 : f32 to vector<8x32xf32>
    %184 = arith.select %174, %183, %164 : vector<8x32xi1>, vector<8x32xf32>
    %cst_82 = arith.constant dense<0xFF800000> : vector<8xf32>
    %185 = vector.multi_reduction <maximumf>, %184, %cst_82 [1] : vector<8x32xf32> to vector<8xf32>
    %186 = vector.shape_cast %185 : vector<8xf32> to vector<8x1xf32>
    %187 = vector.broadcast %186 : vector<8x1xf32> to vector<8x32xf32>
    %188 = arith.cmpf oeq, %184, %187 : vector<8x32xf32>
    %c32_i32_83 = arith.constant 32 : i32
    %189 = vector.broadcast %c32_i32_83 : i32 to vector<8x32xi32>
    %190 = arith.select %188, %103, %189 : vector<8x32xi1>, vector<8x32xi32>
    %cst_84 = arith.constant dense<2147483647> : vector<8xi32>
    %191 = vector.multi_reduction <minsi>, %190, %cst_84 [1] : vector<8x32xi32> to vector<8xi32>
    %192 = vector.shape_cast %191 : vector<8xi32> to vector<8x1xi32>
    %193 = vector.broadcast %192 : vector<8x1xi32> to vector<8x32xi32>
    %194 = arith.cmpi eq, %103, %193 : vector<8x32xi32>
    %195 = arith.extui %194 : vector<8x32xi1> to vector<8x32xi32>
    %196 = arith.sitofp %195 : vector<8x32xi32> to vector<8x32xf32>
    %cst_85 = arith.constant dense<0.000000e+00> : vector<8x32xf32>
    %197 = tpu.matmul %196, %89, %cst_85 {dimension_numbers = #tpu.dot_dimension_numbers<[1], [0], [0], [1], [0, 0, 1, 1], [], []>} : vector<8x32xf32>, vector<32x32xf32>, vector<8x32xf32> -> vector<8x32xf32>
    %198 = vector.broadcast %104 : vector<1x32xf32> to vector<8x32xf32>
    %199 = arith.mulf %196, %198 : vector<8x32xf32>
    %cst_86 = arith.constant dense<0.000000e+00> : vector<8xf32>
    %200 = vector.multi_reduction <add>, %199, %cst_86 [1] : vector<8x32xf32> to vector<8xf32>
    %201 = vector.shape_cast %200 : vector<8xf32> to vector<8x1xf32>
    %202 = arith.subf %88, %197 : vector<8x32xf32>
    %cst_87 = arith.constant 0xFF800000 : f32
    %203 = vector.broadcast %cst_87 : f32 to vector<8x32xf32>
    %204 = arith.select %194, %203, %184 : vector<8x32xi1>, vector<8x32xf32>
    %cst_88 = arith.constant dense<0xFF800000> : vector<8xf32>
    %205 = vector.multi_reduction <maximumf>, %204, %cst_88 [1] : vector<8x32xf32> to vector<8xf32>
    %206 = vector.shape_cast %205 : vector<8xf32> to vector<8x1xf32>
    %207 = vector.broadcast %206 : vector<8x1xf32> to vector<8x32xf32>
    %208 = arith.cmpf oeq, %204, %207 : vector<8x32xf32>
    %c32_i32_89 = arith.constant 32 : i32
    %209 = vector.broadcast %c32_i32_89 : i32 to vector<8x32xi32>
    %210 = arith.select %208, %103, %209 : vector<8x32xi1>, vector<8x32xi32>
    %cst_90 = arith.constant dense<2147483647> : vector<8xi32>
    %211 = vector.multi_reduction <minsi>, %210, %cst_90 [1] : vector<8x32xi32> to vector<8xi32>
    %212 = vector.shape_cast %211 : vector<8xi32> to vector<8x1xi32>
    %213 = vector.broadcast %212 : vector<8x1xi32> to vector<8x32xi32>
    %214 = arith.cmpi eq, %103, %213 : vector<8x32xi32>
    %215 = arith.extui %214 : vector<8x32xi1> to vector<8x32xi32>
    %216 = arith.sitofp %215 : vector<8x32xi32> to vector<8x32xf32>
    %cst_91 = arith.constant dense<0.000000e+00> : vector<8x32xf32>
    %217 = tpu.matmul %216, %89, %cst_91 {dimension_numbers = #tpu.dot_dimension_numbers<[1], [0], [0], [1], [0, 0, 1, 1], [], []>} : vector<8x32xf32>, vector<32x32xf32>, vector<8x32xf32> -> vector<8x32xf32>
    %218 = vector.broadcast %104 : vector<1x32xf32> to vector<8x32xf32>
    %219 = arith.mulf %216, %218 : vector<8x32xf32>
    %cst_92 = arith.constant dense<0.000000e+00> : vector<8xf32>
    %220 = vector.multi_reduction <add>, %219, %cst_92 [1] : vector<8x32xf32> to vector<8xf32>
    %221 = vector.shape_cast %220 : vector<8xf32> to vector<8x1xf32>
    %222 = arith.subf %88, %217 : vector<8x32xf32>
    %cst_93 = arith.constant 0xFF800000 : f32
    %223 = vector.broadcast %cst_93 : f32 to vector<8x32xf32>
    %224 = arith.select %214, %223, %204 : vector<8x32xi1>, vector<8x32xf32>
    %cst_94 = arith.constant dense<0xFF800000> : vector<8xf32>
    %225 = vector.multi_reduction <maximumf>, %224, %cst_94 [1] : vector<8x32xf32> to vector<8xf32>
    %226 = vector.shape_cast %225 : vector<8xf32> to vector<8x1xf32>
    %227 = vector.broadcast %226 : vector<8x1xf32> to vector<8x32xf32>
    %228 = arith.cmpf oeq, %224, %227 : vector<8x32xf32>
    %c32_i32_95 = arith.constant 32 : i32
    %229 = vector.broadcast %c32_i32_95 : i32 to vector<8x32xi32>
    %230 = arith.select %228, %103, %229 : vector<8x32xi1>, vector<8x32xi32>
    %cst_96 = arith.constant dense<2147483647> : vector<8xi32>
    %231 = vector.multi_reduction <minsi>, %230, %cst_96 [1] : vector<8x32xi32> to vector<8xi32>
    %232 = vector.shape_cast %231 : vector<8xi32> to vector<8x1xi32>
    %233 = vector.broadcast %232 : vector<8x1xi32> to vector<8x32xi32>
    %234 = arith.cmpi eq, %103, %233 : vector<8x32xi32>
    %235 = arith.extui %234 : vector<8x32xi1> to vector<8x32xi32>
    %236 = arith.sitofp %235 : vector<8x32xi32> to vector<8x32xf32>
    %cst_97 = arith.constant dense<0.000000e+00> : vector<8x32xf32>
    %237 = tpu.matmul %236, %89, %cst_97 {dimension_numbers = #tpu.dot_dimension_numbers<[1], [0], [0], [1], [0, 0, 1, 1], [], []>} : vector<8x32xf32>, vector<32x32xf32>, vector<8x32xf32> -> vector<8x32xf32>
    %238 = vector.broadcast %104 : vector<1x32xf32> to vector<8x32xf32>
    %239 = arith.mulf %236, %238 : vector<8x32xf32>
    %cst_98 = arith.constant dense<0.000000e+00> : vector<8xf32>
    %240 = vector.multi_reduction <add>, %239, %cst_98 [1] : vector<8x32xf32> to vector<8xf32>
    %241 = vector.shape_cast %240 : vector<8xf32> to vector<8x1xf32>
    %242 = arith.subf %88, %237 : vector<8x32xf32>
    %cst_99 = arith.constant 0xFF800000 : f32
    %243 = vector.broadcast %cst_99 : f32 to vector<8x32xf32>
    %244 = arith.select %234, %243, %224 : vector<8x32xi1>, vector<8x32xf32>
    %cst_100 = arith.constant dense<0xFF800000> : vector<8xf32>
    %245 = vector.multi_reduction <maximumf>, %244, %cst_100 [1] : vector<8x32xf32> to vector<8xf32>
    %246 = vector.shape_cast %245 : vector<8xf32> to vector<8x1xf32>
    %247 = vector.broadcast %246 : vector<8x1xf32> to vector<8x32xf32>
    %248 = arith.cmpf oeq, %244, %247 : vector<8x32xf32>
    %c32_i32_101 = arith.constant 32 : i32
    %249 = vector.broadcast %c32_i32_101 : i32 to vector<8x32xi32>
    %250 = arith.select %248, %103, %249 : vector<8x32xi1>, vector<8x32xi32>
    %cst_102 = arith.constant dense<2147483647> : vector<8xi32>
    %251 = vector.multi_reduction <minsi>, %250, %cst_102 [1] : vector<8x32xi32> to vector<8xi32>
    %252 = vector.shape_cast %251 : vector<8xi32> to vector<8x1xi32>
    %253 = vector.broadcast %252 : vector<8x1xi32> to vector<8x32xi32>
    %254 = arith.cmpi eq, %103, %253 : vector<8x32xi32>
    %255 = arith.extui %254 : vector<8x32xi1> to vector<8x32xi32>
    %256 = arith.sitofp %255 : vector<8x32xi32> to vector<8x32xf32>
    %cst_103 = arith.constant dense<0.000000e+00> : vector<8x32xf32>
    %257 = tpu.matmul %256, %89, %cst_103 {dimension_numbers = #tpu.dot_dimension_numbers<[1], [0], [0], [1], [0, 0, 1, 1], [], []>} : vector<8x32xf32>, vector<32x32xf32>, vector<8x32xf32> -> vector<8x32xf32>
    %258 = vector.broadcast %104 : vector<1x32xf32> to vector<8x32xf32>
    %259 = arith.mulf %256, %258 : vector<8x32xf32>
    %cst_104 = arith.constant dense<0.000000e+00> : vector<8xf32>
    %260 = vector.multi_reduction <add>, %259, %cst_104 [1] : vector<8x32xf32> to vector<8xf32>
    %261 = vector.shape_cast %260 : vector<8xf32> to vector<8x1xf32>
    %262 = arith.subf %88, %257 : vector<8x32xf32>
    %263 = tpu.concatenate %122, %142, %162, %182, %202, %222, %242, %262 in 0 : vector<8x32xf32>, vector<8x32xf32>, vector<8x32xf32>, vector<8x32xf32>, vector<8x32xf32>, vector<8x32xf32>, vector<8x32xf32>, vector<8x32xf32> -> vector<64x32xf32>
    %264 = tpu.concatenate %106, %126, %146, %166, %186, %206, %226, %246 in 1 : vector<8x1xf32>, vector<8x1xf32>, vector<8x1xf32>, vector<8x1xf32>, vector<8x1xf32>, vector<8x1xf32>, vector<8x1xf32>, vector<8x1xf32> -> vector<8x8xf32>
    %265 = tpu.concatenate %121, %141, %161, %181, %201, %221, %241, %261 in 0 : vector<8x1xf32>, vector<8x1xf32>, vector<8x1xf32>, vector<8x1xf32>, vector<8x1xf32>, vector<8x1xf32>, vector<8x1xf32>, vector<8x1xf32> -> vector<64x1xf32>
    %c0_105 = arith.constant 0 : index
    %c0_106 = arith.constant 0 : index
    %266 = vector.load %arg21[%c0_105, %c0_106] : memref<1x32xf32, #tpu.memory_space<vmem>>, vector<1x32xf32>
    %267 = vector.broadcast %265 : vector<64x1xf32> to vector<64x32xf32>
    %268 = vector.broadcast %266 : vector<1x32xf32> to vector<64x32xf32>
    %269 = arith.mulf %267, %268 : vector<64x32xf32>
    %c0_107 = arith.constant 0 : index
    %c0_108 = arith.constant 0 : index
    %270 = vector.load %arg22[%c0_107, %c0_108] : memref<1x32xf32, #tpu.memory_space<vmem>>, vector<1x32xf32>
    %271 = vector.broadcast %270 : vector<1x32xf32> to vector<64x32xf32>
    %272 = arith.addf %269, %271 : vector<64x32xf32>
    %c0_109 = arith.constant 0 : index
    %c0_110 = arith.constant 0 : index
    %273 = vector.load %arg23[%c0_109, %c0_110] : memref<32x64xf32, #tpu.memory_space<vmem>>, vector<32x64xf32>
    %cst_111 = arith.constant dense<0.000000e+00> : vector<64x64xf32>
    %274 = tpu.matmul %263, %273, %cst_111 {dimension_numbers = #tpu.dot_dimension_numbers<[1], [0], [0], [1], [0, 0, 1, 1], [], []>} : vector<64x32xf32>, vector<32x64xf32>, vector<64x64xf32> -> vector<64x64xf32>
    %c0_112 = arith.constant 0 : index
    %c0_113 = arith.constant 0 : index
    %275 = vector.load %arg24[%c0_112, %c0_113] : memref<1x64xf32, #tpu.memory_space<vmem>>, vector<1x64xf32>
    %276 = vector.broadcast %275 : vector<1x64xf32> to vector<64x64xf32>
    %277 = arith.addf %274, %276 : vector<64x64xf32>
    %cst_114 = arith.constant 0.000000e+00 : f32
    %278 = vector.broadcast %cst_114 : f32 to vector<64x64xf32>
    %279 = arith.maximumf %277, %278 : vector<64x64xf32>
    %c0_115 = arith.constant 0 : index
    %c0_116 = arith.constant 0 : index
    %280 = vector.load %arg25[%c0_115, %c0_116] : memref<64x32xf32, #tpu.memory_space<vmem>>, vector<64x32xf32>
    %cst_117 = arith.constant dense<0.000000e+00> : vector<64x32xf32>
    %281 = tpu.matmul %279, %280, %cst_117 {dimension_numbers = #tpu.dot_dimension_numbers<[1], [0], [0], [1], [0, 0, 1, 1], [], []>} : vector<64x64xf32>, vector<64x32xf32>, vector<64x32xf32> -> vector<64x32xf32>
    %282 = arith.addf %272, %281 : vector<64x32xf32>
    %cst_118 = arith.constant dense<0xFF800000> : vector<8xf32>
    %283 = vector.multi_reduction <maximumf>, %264, %cst_118 [1] : vector<8x8xf32> to vector<8xf32>
    %284 = vector.shape_cast %283 : vector<8xf32> to vector<8x1xf32>
    %285 = vector.broadcast %284 : vector<8x1xf32> to vector<8x8xf32>
    %286 = arith.subf %264, %285 : vector<8x8xf32>
    %287 = math.exp %286 : vector<8x8xf32>
    %cst_119 = arith.constant dense<0.000000e+00> : vector<8xf32>
    %288 = vector.multi_reduction <add>, %287, %cst_119 [1] : vector<8x8xf32> to vector<8xf32>
    %289 = vector.shape_cast %288 : vector<8xf32> to vector<8x1xf32>
    %290 = tpu.reciprocal %289 {approx = true} : vector<8x1xf32> -> vector<8x1xf32>
    %291 = vector.broadcast %290 : vector<8x1xf32> to vector<8x8xf32>
    %292 = arith.mulf %287, %291 : vector<8x8xf32>
    %cst_120 = arith.constant 0.000000e+00 : f32
    %293 = vector.broadcast %cst_120 : f32 to vector<8x32xf32>
    %294 = vector.extract_strided_slice %292 {offsets = [0, 0], sizes = [8, 1], strides = [1, 1]} : vector<8x8xf32> to vector<8x1xf32>
    %295 = vector.extract_strided_slice %282 {offsets = [0, 0], sizes = [8, 32], strides = [1, 1]} : vector<64x32xf32> to vector<8x32xf32>
    %296 = vector.broadcast %294 : vector<8x1xf32> to vector<8x32xf32>
    %297 = arith.mulf %296, %295 : vector<8x32xf32>
    %298 = arith.addf %293, %297 : vector<8x32xf32>
    %299 = vector.extract_strided_slice %292 {offsets = [0, 1], sizes = [8, 1], strides = [1, 1]} : vector<8x8xf32> to vector<8x1xf32>
    %300 = vector.extract_strided_slice %282 {offsets = [8, 0], sizes = [8, 32], strides = [1, 1]} : vector<64x32xf32> to vector<8x32xf32>
    %301 = vector.broadcast %299 : vector<8x1xf32> to vector<8x32xf32>
    %302 = arith.mulf %301, %300 : vector<8x32xf32>
    %303 = arith.addf %298, %302 : vector<8x32xf32>
    %304 = vector.extract_strided_slice %292 {offsets = [0, 2], sizes = [8, 1], strides = [1, 1]} : vector<8x8xf32> to vector<8x1xf32>
    %305 = vector.extract_strided_slice %282 {offsets = [16, 0], sizes = [8, 32], strides = [1, 1]} : vector<64x32xf32> to vector<8x32xf32>
    %306 = vector.broadcast %304 : vector<8x1xf32> to vector<8x32xf32>
    %307 = arith.mulf %306, %305 : vector<8x32xf32>
    %308 = arith.addf %303, %307 : vector<8x32xf32>
    %309 = vector.extract_strided_slice %292 {offsets = [0, 3], sizes = [8, 1], strides = [1, 1]} : vector<8x8xf32> to vector<8x1xf32>
    %310 = vector.extract_strided_slice %282 {offsets = [24, 0], sizes = [8, 32], strides = [1, 1]} : vector<64x32xf32> to vector<8x32xf32>
    %311 = vector.broadcast %309 : vector<8x1xf32> to vector<8x32xf32>
    %312 = arith.mulf %311, %310 : vector<8x32xf32>
    %313 = arith.addf %308, %312 : vector<8x32xf32>
    %314 = vector.extract_strided_slice %292 {offsets = [0, 4], sizes = [8, 1], strides = [1, 1]} : vector<8x8xf32> to vector<8x1xf32>
    %315 = vector.extract_strided_slice %282 {offsets = [32, 0], sizes = [8, 32], strides = [1, 1]} : vector<64x32xf32> to vector<8x32xf32>
    %316 = vector.broadcast %314 : vector<8x1xf32> to vector<8x32xf32>
    %317 = arith.mulf %316, %315 : vector<8x32xf32>
    %318 = arith.addf %313, %317 : vector<8x32xf32>
    %319 = vector.extract_strided_slice %292 {offsets = [0, 5], sizes = [8, 1], strides = [1, 1]} : vector<8x8xf32> to vector<8x1xf32>
    %320 = vector.extract_strided_slice %282 {offsets = [40, 0], sizes = [8, 32], strides = [1, 1]} : vector<64x32xf32> to vector<8x32xf32>
    %321 = vector.broadcast %319 : vector<8x1xf32> to vector<8x32xf32>
    %322 = arith.mulf %321, %320 : vector<8x32xf32>
    %323 = arith.addf %318, %322 : vector<8x32xf32>
    %324 = vector.extract_strided_slice %292 {offsets = [0, 6], sizes = [8, 1], strides = [1, 1]} : vector<8x8xf32> to vector<8x1xf32>
    %325 = vector.extract_strided_slice %282 {offsets = [48, 0], sizes = [8, 32], strides = [1, 1]} : vector<64x32xf32> to vector<8x32xf32>
    %326 = vector.broadcast %324 : vector<8x1xf32> to vector<8x32xf32>
    %327 = arith.mulf %326, %325 : vector<8x32xf32>
    %328 = arith.addf %323, %327 : vector<8x32xf32>
    %329 = vector.extract_strided_slice %292 {offsets = [0, 7], sizes = [8, 1], strides = [1, 1]} : vector<8x8xf32> to vector<8x1xf32>
    %330 = vector.extract_strided_slice %282 {offsets = [56, 0], sizes = [8, 32], strides = [1, 1]} : vector<64x32xf32> to vector<8x32xf32>
    %331 = vector.broadcast %329 : vector<8x1xf32> to vector<8x32xf32>
    %332 = arith.mulf %331, %330 : vector<8x32xf32>
    %333 = arith.addf %328, %332 : vector<8x32xf32>
    %334 = arith.addf %87, %333 : vector<8x32xf32>
    %c0_121 = arith.constant 0 : index
    %c0_122 = arith.constant 0 : index
    %335 = vector.load %arg26[%c0_121, %c0_122] : memref<1x32xf32, #tpu.memory_space<vmem>>, vector<1x32xf32>
    %c0_123 = arith.constant 0 : index
    %c0_124 = arith.constant 0 : index
    %336 = vector.load %arg27[%c0_123, %c0_124] : memref<1x32xf32, #tpu.memory_space<vmem>>, vector<1x32xf32>
    %c0_125 = arith.constant 0 : index
    %c0_126 = arith.constant 0 : index
    %337 = vector.load %arg28[%c0_125, %c0_126] : memref<32x64xf32, #tpu.memory_space<vmem>>, vector<32x64xf32>
    %c0_127 = arith.constant 0 : index
    %c0_128 = arith.constant 0 : index
    %338 = vector.load %arg29[%c0_127, %c0_128] : memref<1x64xf32, #tpu.memory_space<vmem>>, vector<1x64xf32>
    %c0_129 = arith.constant 0 : index
    %c0_130 = arith.constant 0 : index
    %339 = vector.load %arg30[%c0_129, %c0_130] : memref<64x32xf32, #tpu.memory_space<vmem>>, vector<64x32xf32>
    %c0_131 = arith.constant 0 : index
    %c0_132 = arith.constant 0 : index
    %340 = vector.load %arg31[%c0_131, %c0_132] : memref<1x32xf32, #tpu.memory_space<vmem>>, vector<1x32xf32>
    %cst_133 = arith.constant dense<0.000000e+00> : vector<8xf32>
    %341 = vector.multi_reduction <add>, %334, %cst_133 [1] : vector<8x32xf32> to vector<8xf32>
    %342 = vector.shape_cast %341 : vector<8xf32> to vector<8x1xf32>
    %cst_134 = arith.constant 3.200000e+01 : f32
    %343 = vector.broadcast %cst_134 : f32 to vector<8x1xf32>
    %344 = arith.divf %342, %343 : vector<8x1xf32>
    %345 = vector.broadcast %344 : vector<8x1xf32> to vector<8x32xf32>
    %346 = arith.subf %334, %345 : vector<8x32xf32>
    %347 = arith.mulf %346, %346 : vector<8x32xf32>
    %cst_135 = arith.constant dense<0.000000e+00> : vector<8xf32>
    %348 = vector.multi_reduction <add>, %347, %cst_135 [1] : vector<8x32xf32> to vector<8xf32>
    %349 = vector.shape_cast %348 : vector<8xf32> to vector<8x1xf32>
    %cst_136 = arith.constant 3.200000e+01 : f32
    %350 = vector.broadcast %cst_136 : f32 to vector<8x1xf32>
    %351 = arith.divf %349, %350 : vector<8x1xf32>
    %352 = vector.broadcast %344 : vector<8x1xf32> to vector<8x32xf32>
    %353 = arith.subf %334, %352 : vector<8x32xf32>
    %cst_137 = arith.constant 9.99999974E-6 : f32
    %354 = vector.broadcast %cst_137 : f32 to vector<8x1xf32>
    %355 = arith.addf %351, %354 : vector<8x1xf32>
    %356 = math.rsqrt %355 : vector<8x1xf32>
    %357 = vector.broadcast %356 : vector<8x1xf32> to vector<8x32xf32>
    %358 = arith.mulf %353, %357 : vector<8x32xf32>
    %359 = vector.broadcast %335 : vector<1x32xf32> to vector<8x32xf32>
    %360 = arith.mulf %358, %359 : vector<8x32xf32>
    %361 = vector.broadcast %336 : vector<1x32xf32> to vector<8x32xf32>
    %362 = arith.addf %360, %361 : vector<8x32xf32>
    %cst_138 = arith.constant dense<0.000000e+00> : vector<8x64xf32>
    %363 = tpu.matmul %362, %337, %cst_138 {dimension_numbers = #tpu.dot_dimension_numbers<[1], [0], [0], [1], [0, 0, 1, 1], [], []>} : vector<8x32xf32>, vector<32x64xf32>, vector<8x64xf32> -> vector<8x64xf32>
    %364 = vector.broadcast %338 : vector<1x64xf32> to vector<8x64xf32>
    %365 = arith.addf %363, %364 : vector<8x64xf32>
    %cst_139 = arith.constant 0.000000e+00 : f32
    %366 = vector.broadcast %cst_139 : f32 to vector<8x64xf32>
    %367 = arith.maximumf %365, %366 : vector<8x64xf32>
    %cst_140 = arith.constant dense<0.000000e+00> : vector<8x32xf32>
    %368 = tpu.matmul %367, %339, %cst_140 {dimension_numbers = #tpu.dot_dimension_numbers<[1], [0], [0], [1], [0, 0, 1, 1], [], []>} : vector<8x64xf32>, vector<64x32xf32>, vector<8x32xf32> -> vector<8x32xf32>
    %369 = vector.broadcast %340 : vector<1x32xf32> to vector<8x32xf32>
    %370 = arith.addf %368, %369 : vector<8x32xf32>
    %371 = arith.addf %334, %370 : vector<8x32xf32>
    %c0_141 = arith.constant 0 : index
    %c0_142 = arith.constant 0 : index
    %372 = vector.load %arg32[%c0_141, %c0_142] : memref<1x32xf32, #tpu.memory_space<vmem>>, vector<1x32xf32>
    %c0_143 = arith.constant 0 : index
    %c0_144 = arith.constant 0 : index
    %373 = vector.load %arg33[%c0_143, %c0_144] : memref<1x32xf32, #tpu.memory_space<vmem>>, vector<1x32xf32>
    %cst_145 = arith.constant dense<0.000000e+00> : vector<8xf32>
    %374 = vector.multi_reduction <add>, %371, %cst_145 [1] : vector<8x32xf32> to vector<8xf32>
    %375 = vector.shape_cast %374 : vector<8xf32> to vector<8x1xf32>
    %cst_146 = arith.constant 3.200000e+01 : f32
    %376 = vector.broadcast %cst_146 : f32 to vector<8x1xf32>
    %377 = arith.divf %375, %376 : vector<8x1xf32>
    %378 = vector.broadcast %377 : vector<8x1xf32> to vector<8x32xf32>
    %379 = arith.subf %371, %378 : vector<8x32xf32>
    %380 = arith.mulf %379, %379 : vector<8x32xf32>
    %cst_147 = arith.constant dense<0.000000e+00> : vector<8xf32>
    %381 = vector.multi_reduction <add>, %380, %cst_147 [1] : vector<8x32xf32> to vector<8xf32>
    %382 = vector.shape_cast %381 : vector<8xf32> to vector<8x1xf32>
    %cst_148 = arith.constant 3.200000e+01 : f32
    %383 = vector.broadcast %cst_148 : f32 to vector<8x1xf32>
    %384 = arith.divf %382, %383 : vector<8x1xf32>
    %385 = vector.broadcast %377 : vector<8x1xf32> to vector<8x32xf32>
    %386 = arith.subf %371, %385 : vector<8x32xf32>
    %cst_149 = arith.constant 9.99999974E-6 : f32
    %387 = vector.broadcast %cst_149 : f32 to vector<8x1xf32>
    %388 = arith.addf %384, %387 : vector<8x1xf32>
    %389 = math.rsqrt %388 : vector<8x1xf32>
    %390 = vector.broadcast %389 : vector<8x1xf32> to vector<8x32xf32>
    %391 = arith.mulf %386, %390 : vector<8x32xf32>
    %392 = vector.broadcast %372 : vector<1x32xf32> to vector<8x32xf32>
    %393 = arith.mulf %391, %392 : vector<8x32xf32>
    %394 = vector.broadcast %373 : vector<1x32xf32> to vector<8x32xf32>
    %395 = arith.addf %393, %394 : vector<8x32xf32>
    %cst_150 = arith.constant 0.000000e+00 : f32
    %396 = vector.broadcast %cst_150 : f32 to vector<8x32xf32>
    %397 = arith.maximumf %395, %396 : vector<8x32xf32>
    %c0_151 = arith.constant 0 : index
    %c0_152 = arith.constant 0 : index
    %398 = vector.load %arg34[%c0_151, %c0_152] : memref<32x1xf32, #tpu.memory_space<vmem>>, vector<32x1xf32>
    %cst_153 = arith.constant dense<0.000000e+00> : vector<8x1xf32>
    %399 = tpu.matmul %397, %398, %cst_153 {dimension_numbers = #tpu.dot_dimension_numbers<[1], [0], [0], [1], [0, 0, 1, 1], [], []>} : vector<8x32xf32>, vector<32x1xf32>, vector<8x1xf32> -> vector<8x1xf32>
    %c0_154 = arith.constant 0 : index
    %c0_155 = arith.constant 0 : index
    %400 = vector.load %arg35[%c0_154, %c0_155] : memref<1x1xf32, #tpu.memory_space<vmem>>, vector<1x1xf32>
    %401 = vector.broadcast %400 : vector<1x1xf32> to vector<8x1xf32>
    %402 = arith.addf %399, %401 : vector<8x1xf32>
    %c0_156 = arith.constant 0 : index
    %c0_157 = arith.constant 0 : index
    %403 = vector.load %arg36[%c0_156, %c0_157] : memref<8x1xf32, #tpu.memory_space<vmem>>, vector<8x1xf32>
    tpu.vector_store %arg36[%c0_156, %c0_157], %402 {strides = array<i32>} : memref<8x1xf32, #tpu.memory_space<vmem>>, vector<8x1xf32>,
    return
  }
}

</mosaic_0001>

<bundles_post_ra>
// kernel: tpu_custom_call.1
= control target key start
LH: loop header
LB: loop body
LE: loop exit
PB: predicated region body
PF: predicated region fallthrough
CT: control target
= control target key end

     0   :  { %v3546_v0 = vmov 0.0   ;;  %s3547_s3 = smov 3   ;;  %vm3548_vm0 = vmmov 0   ;;  %s3549_s10 = smov 1   ;;  %vm165_vm1 = vcmask 64512   ;;  %vm291_vm2 = vcmask 261120   ;;  %s4322_s0 = inlined_call_operand.smem [shape: u32[37], index: -1, kind: input, shape index: {}] }
   0x1   :  { %3115 = vmatprep.subr.mxu0 %v3546_v0  ;;  %s2831_s6 = sld [smem:[%s4322_s0 + %s3547_s3]]   ;;  %3117 = vmatprep.mubr.msk.f32.mxu0 %vm3548_vm0, %v3546_v0  ;;  %s3550_s14 = smov 7   ;;  %vm408_vm3 = vcmask 523264  }
   0x2   :  { %s1_s9 = sld [smem:[%s4322_s0]]   ;;  %3132 = vmatprep.subr.mxu1 %v3546_v0  ;;  %3140 = vmatprep.mubr.msk.f32.mxu1 %vm3548_vm0, %v3546_v0  ;;  %s3551_s18 = smov 9  }
   0x3   :  { %s2829_s13 = sld [smem:[%s4322_s0 + %s3549_s10]]   ;;  %s3552_s22 = smov 4  }
   0x4   :  { %s2833_s17 = sld [smem:[%s4322_s0 + %s3550_s14]]   ;;  %s3553_s26 = smov 8  }
   0x5   :  { %s3637_s21 = sld [smem:[%s4322_s0 + %s3551_s18]]   ;;  %s3554_s30 = smov 10  }
   0x6   :  { %s2832_s25 = sld [smem:[%s4322_s0 + %s3552_s22]]   ;;  %s3555_s4 = smov 13  }
   0x7   :  { %v157_v1 = vld [vmem:[%s2831_s6] sm:$0xff]  ;;  %s2834_s29 = sld [smem:[%s4322_s0 + %s3553_s26]]   ;;  %s3556_s8 = smov 15  }
   0x8   :  { %3116 = vmatpush3.msra.mxu0 %v157_v1  ;;  %v152_v2 = vld [vmem:[%s1_s9] sm:$0xff]  ;;  %s2836_s3 = sld [smem:[%s4322_s0 + %s3554_s30]]   ;;  %s3557_s12 = smov 11  }
   0x9   :  { %3118 = vmatmul.mubr.msk.f32.vlgmr.msra.gmra.mxu0 %vm165_vm1, %v152_v2  ;;  %3155 = vmatprep.subr.mxu0 %v3546_v0  ;;  %v153_v3 = vld [vmem:[%s2829_s13] sm:$0xff]  ;;  %v154_v6 = vld [vmem:[%s2829_s13 + $0x8] sm:$0xff]  ;;  %v155_v7 = vld [vmem:[%s2829_s13 + $0x10] sm:$0xff]  ;;  %s2839_s7 = sld [smem:[%s4322_s0 + %s3555_s4]]   ;;  %s3558_s16 = smov 12  }
   0xa   :  { %3120 = vmatprep.mubr.msk.f32.mxu0 %vm3548_vm0, %v3546_v0  ;;  %v274_v4 = vld [vmem:[%s2833_s17 + $0x18] sm:$0xff]  ;;  %v273_v5 = vld [vmem:[%s2833_s17 + $0x10] sm:$0xff]  ;;  %v272_v9 = vld [vmem:[%s2833_s17 + $0x8] sm:$0xff]  ;;  %s3774_s11 = sld [smem:[%s4322_s0 + %s3556_s8]]   ;;  %s3559_s20 = smov 14  }
   0xb   :  { %3133 = vmatpush3.msra.mxu1 %v274_v4  ;;  %v156_v8 = vld [vmem:[%s2829_s13 + $0x18] sm:$0xff]  ;;  %v271_v10 = vld [vmem:[%s2833_s17] sm:$0xff]  ;;  %v282_v12 = vld [vmem:[%s3637_s21 + $0x30] sm:$0xff]  ;;  %s2837_s15 = sld [smem:[%s4322_s0 + %s3557_s12]]   ;;  %s3560_s24 = smov 16  }
   0xc   :  { %3134 = vmatprep.subr.mxu1 %v3546_v0  ;;  %v283_v11 = vld [vmem:[%s3637_s21 + $0x38] sm:$0xff]  ;;  %v281_v13 = vld [vmem:[%s3637_s21 + $0x28] sm:$0xff]  ;;  %v280_v14 = vld [vmem:[%s3637_s21 + $0x20] sm:$0xff]  ;;  %s2838_s19 = sld [smem:[%s4322_s0 + %s3558_s16]]   ;;  %s3561_s28 = smov 19  }
   0xd   :  { %3121 = vmatmul.mubr.msk.f32.gmra.mxu0 %vm165_vm1, %v153_v3  ;;  %3135 = vmatpush3.msra.mxu1 %v273_v5  ;;  %v279_v15 = vld [vmem:[%s3637_s21 + $0x18] sm:$0xff]  ;;  %v2863_v16 = vld [vmem:[%s2832_s25] ss:$0 sm:$0xff]  ;;  %v278_v32 = vld [vmem:[%s3637_s21 + $0x10] sm:$0xff]  ;;  %s2840_s23 = sld [smem:[%s4322_s0 + %s3559_s20]]   ;;  %s3562_s2 = smov 17  }
   0xe   :  { %3123 = vmatprep.mubr.msk.f32.mxu0 %vm3548_vm0, %v3546_v0  ;;  %3136 = vmatprep.subr.mxu1 %v3546_v0  ;;  %v277_v33 = vld [vmem:[%s3637_s21 + $0x8] sm:$0xff]  ;;  %v276_v34 = vld [vmem:[%s3637_s21] sm:$0xff]  ;;  %s2842_s27 = sld [smem:[%s4322_s0 + %s3560_s24]]   ;;  %s3563_s6 = smov 18  }
   0xf   :  { %3137 = vmatpush3.msra.mxu1 %v272_v9  ;;  %3156 = vmatpush3.msra.mxu0 %v283_v11  ;;  %v2869_v35 = vld [vmem:[%s2834_s29] ss:$0 sm:$0xff]  ;;  %s2845_s1 = sld [smem:[%s4322_s0 + %s3561_s28]]   ;;  %s3564_s10 = smov 20  }
  0x10   :  { %3138 = vmatprep.subr.mxu1 %v3546_v0  ;;  %3157 = vmatprep.subr.mxu0 %v3546_v0  ;;  %v2875_v56 = vld [vmem:[%s2836_s3] ss:$0 sm:$0xff]  ;;  %s2843_s5 = sld [smem:[%s4322_s0 + %s3562_s2]]   ;;  %s3566_s14 = smov 23  }
  0x11   :  { %3124 = vmatmul.mubr.msk.f32.gmra.mxu0 %vm165_vm1, %v154_v6  ;;  %3139 = vmatpush3.msra.mxu1 %v271_v10  ;;  %s2844_s9 = sld [smem:[%s4322_s0 + %s3563_s6]]   ;;  %s3567_s18 = smov 2  }
  0x12   :  { %3126 = vmatprep.mubr.msk.f32.mxu0 %vm3548_vm0, %v3546_v0  ;;  %3186 = vmatprep.subr.mxu1 %v3546_v0  ;;  %s2846_s13 = sld [smem:[%s4322_s0 + %s3564_s10]]   ;;  %s3569_s22 = smov 25  }
  0x13   :  { %3158 = vmatpush3.msra.mxu0 %v282_v12  ;;  %s2849_s17 = sld [smem:[%s4322_s0 + %s3566_s14]]   ;;  %s3570_s26 = smov 24  }
  0x14   :  { %3159 = vmatprep.subr.mxu0 %v3546_v0  ;;  %s2830_s21 = sld [smem:[%s4322_s0 + %s3567_s18]]   ;;  %s3578_s30 = smov 21  }
  0x15   :  { %3127 = vmatmul.mubr.msk.f32.gmra.mxu0 %vm165_vm1, %v155_v7  ;;  %s4185_s25 = sld [smem:[%s4322_s0 + %s3569_s22]]   ;;  %s3579_s4 = smov 22  }
  0x16   :  { %3129 = vmatprep.mubr.msk.f32.mxu0 %vm3548_vm0, %v3546_v0  ;;  %3160 = vmatpush3.msra.mxu0 %v281_v13  ;;  %s2850_s29 = sld [smem:[%s4322_s0 + %s3570_s26]]   ;;  %s3580_s8 = smov 28  }
  0x17   :  { %3161 = vmatprep.subr.mxu0 %v3546_v0  ;;  %s2847_s3 = sld [smem:[%s4322_s0 + %s3578_s30]]   ;;  %s3581_s12 = smov 30  }
  0x18   :  { %3162 = vmatpush3.msra.mxu0 %v280_v14  ;;  %s3582_s16 = smov 26   ;;  %s3583_s20 = smov 27  }
  0x19   :  { %3130 = vmatmul.mubr.msk.f32.gmra.mxu0 %vm165_vm1, %v156_v8  ;;  %3163 = vmatprep.subr.mxu0 %v3546_v0  ;;  %s3584_s24 = smov 29   ;;  %s3585_s28 = smov 31  }
  0x1a   :  { %3171 = vmatprep.mubr.msk.f32.mxu0 %vm3548_vm0, %v3546_v0  ;;  %3164 = vmatpush3.msra.mxu0 %v279_v15  ;;  %s3586_s2 = smov 34   ;;  %s3587_s6 = smov 35  }
  0x1b   :  { %3165 = vmatprep.subr.mxu0 %v3546_v0  ;;  %s3588_s10 = smov 32   ;;  %s3589_s14 = smov 33  }
  0x1c   :  { %3166 = vmatpush3.msra.mxu0 %v278_v32  ;;  %s3590_s18 = smov 36  }
  0x1d   :  { %3167 = vmatprep.subr.mxu0 %v3546_v0 }
  0x1e   :  { %3168 = vmatpush3.msra.mxu0 %v277_v33 }
  0x1f   :  { %3169 = vmatprep.subr.mxu0 %v3546_v0 }
  0x20   :  { %3170 = vmatpush3.msra.mxu0 %v276_v34 }
  0x21   :  { %3209 = vmatprep.subr.mxu0 %v3546_v0 }
  0xc9   :  { %v247_v17 = vpop.f32.mrf.mxu0 }
  0xca   :  { %v3652_v18 = vadd.f32 %v2863_v16, %v247_v17 }
  0xcb   :  { %v3119_v19 = vpop.f32.mrf.mxu0 }
  0xcc   :  { %3141 = vmatmul.mubr.msk.f32.vlgmr.msra.gmra.mxu1 %vm291_vm2, %v3652_v18 }
  0xcd   :  { %v252_v20 = vpop.f32.mrf.mxu0  ;;  %3143 = vmatprep.mubr.msk.f32.mxu1 %vm3548_vm0, %v3546_v0 }
  0xce   :  { %v3658_v21 = vadd.f32 %v2863_v16, %v252_v20 }
  0xcf   :  { %v3122_v22 = vpop.f32.mrf.mxu0 }
  0xd0   :  { %3144 = vmatmul.mubr.msk.f32.gmra.mxu1 %vm291_vm2, %v3658_v21 }
  0xd1   :  { %v257_v23 = vpop.f32.mrf.mxu0  ;;  %3146 = vmatprep.mubr.msk.f32.mxu1 %vm3548_vm0, %v3546_v0 }
  0xd2   :  { %v3664_v24 = vadd.f32 %v2863_v16, %v257_v23 }
  0xd3   :  { %v3125_v25 = vpop.f32.mrf.mxu0 }
  0xd4   :  { %3147 = vmatmul.mubr.msk.f32.gmra.mxu1 %vm291_vm2, %v3664_v24 }
  0xd5   :  { %v262_v26 = vpop.f32.mrf.mxu0  ;;  %3149 = vmatprep.mubr.msk.f32.mxu1 %vm3548_vm0, %v3546_v0 }
  0xd6   :  { %v3670_v27 = vadd.f32 %v2863_v16, %v262_v26 }
  0xd7   :  { %v3128_v28 = vpop.f32.mrf.mxu0 }
  0xd8   :  { %3150 = vmatmul.mubr.msk.f32.gmra.mxu1 %vm291_vm2, %v3670_v27 }
  0xd9   :  { %v267_v29 = vpop.f32.mrf.mxu0  ;;  %3152 = vmatprep.mubr.msk.f32.mxu1 %vm3548_vm0, %v3546_v0 }
  0xda   :  { %v3676_v30 = vadd.f32 %v2863_v16, %v267_v29 }
  0xdb   :  { %v3131_v31 = vpop.f32.mrf.mxu0 }
  0xdc   :  { %3153 = vmatmul.mubr.msk.f32.gmra.mxu1 %vm291_vm2, %v3676_v30 }
  0xdd   :  { %3194 = vmatprep.mubr.msk.f32.mxu1 %vm3548_vm0, %v3546_v0 }
 0x18c   :  { %v373_v36 = vpop.f32.mrf.mxu1 }
 0x18d   :  { %v374_v37 = vadd.f32 %v2869_v35, %v373_v36 }
 0x18e   :  { %v3142_v38 = vpop.f32.mrf.mxu1 }
 0x18f   :  { %v397_v39 = vmax.f32 %v374_v37, 0.0 }
 0x190   :  { %v378_v40 = vpop.f32.mrf.mxu1 }
 0x191   :  { %v379_v41 = vadd.f32 %v2869_v35, %v378_v40  ;;  %3172 = vmatmul.mubr.msk.f32.vlgmr.msra.gmra.mxu0 %vm408_vm3, %v397_v39 }
 0x192   :  { %v3145_v42 = vpop.f32.mrf.mxu1  ;;  %3174 = vmatprep.mubr.msk.f32.mxu0 %vm3548_vm0, %v3546_v0 }
 0x193   :  { %v398_v43 = vmax.f32 %v379_v41, 0.0 }
 0x194   :  { %v383_v44 = vpop.f32.mrf.mxu1 }
 0x195   :  { %v384_v45 = vadd.f32 %v2869_v35, %v383_v44  ;;  %3175 = vmatmul.mubr.msk.f32.gmra.mxu0 %vm408_vm3, %v398_v43  ;;  %v524_v44 = vld [vmem:[%s2839_s7 + $0x18] sm:$0xff] }
 0x196   :  { %v3148_v46 = vpop.f32.mrf.mxu1  ;;  %3177 = vmatprep.mubr.msk.f32.mxu0 %vm3548_vm0, %v3546_v0  ;;  %3187 = vmatpush3.msra.mxu1 %v524_v44 }
 0x197   :  { %v399_v47 = vmax.f32 %v384_v45, 0.0  ;;  %3188 = vmatprep.subr.mxu1 %v3546_v0  ;;  %v523_v45 = vld [vmem:[%s2839_s7 + $0x10] sm:$0xff]  ;;  %v522_v46 = vld [vmem:[%s2839_s7 + $0x8] sm:$0xff] }
 0x198   :  { %v388_v48 = vpop.f32.mrf.mxu1  ;;  %3189 = vmatpush3.msra.mxu1 %v523_v45 }
 0x199   :  { %v389_v49 = vadd.f32 %v2869_v35, %v388_v48  ;;  %3178 = vmatmul.mubr.msk.f32.gmra.mxu0 %vm408_vm3, %v399_v47  ;;  %3190 = vmatprep.subr.mxu1 %v3546_v0  ;;  %v521_v47 = vld [vmem:[%s2839_s7] sm:$0xff]  ;;  %v533_v48 = vld [vmem:[%s3774_s11 + $0x38] sm:$0xff]  ;;  %s2848_s7 = sld [smem:[%s4322_s0 + %s3579_s4]]  }
 0x19a   :  { %v3151_v50 = vpop.f32.mrf.mxu1  ;;  %3180 = vmatprep.mubr.msk.f32.mxu0 %vm3548_vm0, %v3546_v0  ;;  %3191 = vmatpush3.msra.mxu1 %v522_v46 }
 0x19b   :  { %v400_v51 = vmax.f32 %v389_v49, 0.0  ;;  %3192 = vmatprep.subr.mxu1 %v3546_v0  ;;  %v532_v49 = vld [vmem:[%s3774_s11 + $0x30] sm:$0xff]  ;;  %3210 = vmatpush3.msra.mxu0 %v533_v48  ;;  %v531_v50 = vld [vmem:[%s3774_s11 + $0x28] sm:$0xff] }
 0x19c   :  { %v393_v52 = vpop.f32.mrf.mxu1  ;;  %3193 = vmatpush3.msra.mxu1 %v521_v47  ;;  %3211 = vmatprep.subr.mxu0 %v3546_v0 }
 0x19d   :  { %v394_v53 = vadd.f32 %v2869_v35, %v393_v52  ;;  %3181 = vmatmul.mubr.msk.f32.gmra.mxu0 %vm408_vm3, %v400_v51  ;;  %3240 = vmatprep.subr.mxu1 %v3546_v0  ;;  %v530_v51 = vld [vmem:[%s3774_s11 + $0x20] sm:$0xff]  ;;  %v529_v52 = vld [vmem:[%s3774_s11 + $0x18] sm:$0xff] }
 0x19e   :  { %v3154_v54 = vpop.f32.mrf.mxu1  ;;  %3183 = vmatprep.mubr.msk.f32.mxu0 %vm3548_vm0, %v3546_v0  ;;  %3212 = vmatpush3.msra.mxu0 %v532_v49 }
 0x19f   :  { %v401_v55 = vmax.f32 %v394_v53, 0.0  ;;  %3213 = vmatprep.subr.mxu0 %v3546_v0 }
 0x1a0   :  { %3214 = vmatpush3.msra.mxu0 %v531_v50 }
 0x1a1   :  { %3184 = vmatmul.mubr.msk.f32.gmra.mxu0 %vm408_vm3, %v401_v55  ;;  %3215 = vmatprep.subr.mxu0 %v3546_v0 }
 0x1a2   :  { %3225 = vmatprep.mubr.msk.f32.mxu0 %vm3548_vm0, %v3546_v0  ;;  %3216 = vmatpush3.msra.mxu0 %v530_v51 }
 0x1a3   :  { %3217 = vmatprep.subr.mxu0 %v3546_v0 }
 0x1a4   :  { %3218 = vmatpush3.msra.mxu0 %v529_v52 }
 0x1a5   :  { %3219 = vmatprep.subr.mxu0 %v3546_v0 }
 0x251   :  { %v490_v57 = vpop.f32.mrf.mxu0 }
 0x252   :  { %v491_v58 = vadd.f32 %v2875_v56, %v490_v57 }
 0x253   :  { %v3173_v59 = vpop.f32.mrf.mxu0 }
 0x254   :  { %v3710_v60 = vadd.f32 %v491_v58, %v3652_v18 }
 0x255   :  { %v495_v61 = vpop.f32.mrf.mxu0 }
 0x256   :  { %v496_v62 = vadd.f32 %v2875_v56, %v495_v61  ;;  %v535_v63 = vsel %vm291_vm2, %v3710_v60, 0.0 }
 0x257   :  { %536 = vadd.xlane.f32.xlu0 %v535_v63  ;;  %v3176_v1 = vpop.f32.mrf.mxu0 }
 0x258   :  { %v3715_v2 = vadd.f32 %v496_v62, %v3658_v21 }
 0x259   :  { %v500_v3 = vpop.f32.mrf.mxu0 }
 0x25a   :  { %v501_v4 = vadd.f32 %v2875_v56, %v500_v3  ;;  %v538_v5 = vsel %vm291_vm2, %v3715_v2, 0.0 }
 0x25b   :  { %539 = vadd.xlane.f32.xlu0 %v538_v5  ;;  %v3179_v6 = vpop.f32.mrf.mxu0 }
 0x25c   :  { %v3720_v7 = vadd.f32 %v501_v4, %v3664_v24 }
 0x25d   :  { %v505_v8 = vpop.f32.mrf.mxu0 }
 0x25e   :  { %v506_v9 = vadd.f32 %v2875_v56, %v505_v8  ;;  %v541_v10 = vsel %vm291_vm2, %v3720_v7, 0.0  ;;  %v2881_v8 = vld [vmem:[%s2837_s15] ss:$0 sm:$0xff]  ;;  %s4265_s15 = sld [smem:[%s4322_s0 + %s3581_s12]]  }
 0x25f   :  { %542 = vadd.xlane.f32.xlu1 %v541_v10  ;;  %v3182_v11 = vpop.f32.mrf.mxu0 }
 0x260   :  { %v3725_v12 = vadd.f32 %v506_v9, %v3670_v27  ;;  %v2882_v11 = vld [vmem:[%s2838_s19] ss:$0 sm:$0xff]  ;;  %s2852_s19 = sld [smem:[%s4322_s0 + %s3582_s16]]  }
 0x261   :  { %v510_v13 = vpop.f32.mrf.mxu0 }
 0x262   :  { %v511_v14 = vadd.f32 %v2875_v56, %v510_v13  ;;  %v544_v15 = vsel %vm291_vm2, %v3725_v12, 0.0 }
 0x263   :  { %545 = vadd.xlane.f32.xlu1 %v544_v15  ;;  %v3185_v16 = vpop.f32.mrf.mxu0 }
 0x264   :  { %v3730_v17 = vadd.f32 %v511_v14, %v3676_v30 }
 0x266   :  { %v547_v18 = vsel %vm291_vm2, %v3730_v17, 0.0 }
 0x267   :  { %548 = vadd.xlane.f32.xlu0 %v547_v18 }
 0x2e0   :  { %v537_v19 = vpop.xlane.xlu0 %536 }
 0x2e1   :  { %v551_v20 = vmul.f32 0.03125, %v537_v19 }
 0x2e3   :  { %v3735_v21 = vsub.f32 %v3710_v60, %v551_v20 }
 0x2e4   :  { %v540_v22 = vpop.xlane.xlu0 %539 }
 0x2e5   :  { %v552_v23 = vmul.f32 0.03125, %v540_v22  ;;  %v561_v24 = vmul.f32 %v3735_v21, %v3735_v21 }
 0x2e7   :  { %v3740_v25 = vsub.f32 %v3715_v2, %v552_v23  ;;  %v566_v26 = vsel %vm291_vm2, %v561_v24, 0.0 }
 0x2e8   :  { %v543_v27 = vpop.xlane.xlu1 %542  ;;  %567 = vadd.xlane.f32.xlu1 %v566_v26 }
 0x2e9   :  { %v553_v28 = vmul.f32 0.03125, %v543_v27  ;;  %v562_v29 = vmul.f32 %v3740_v25, %v3740_v25 }
 0x2eb   :  { %v3746_v30 = vsub.f32 %v3720_v7, %v553_v28  ;;  %v569_v31 = vsel %vm291_vm2, %v562_v29, 0.0 }
 0x2ec   :  { %v546_v32 = vpop.xlane.xlu1 %545  ;;  %570 = vadd.xlane.f32.xlu0 %v569_v31 }
 0x2ed   :  { %v554_v33 = vmul.f32 0.03125, %v546_v32  ;;  %v563_v34 = vmul.f32 %v3746_v30, %v3746_v30  ;;  %v528_v32 = vld [vmem:[%s3774_s11 + $0x10] sm:$0xff] }
 0x2ee   :  { %3220 = vmatpush3.msra.mxu0 %v528_v32 }
 0x2ef   :  { %v3752_v35 = vsub.f32 %v3725_v12, %v554_v33  ;;  %v572_v36 = vsel %vm291_vm2, %v563_v34, 0.0  ;;  %3221 = vmatprep.subr.mxu0 %v3546_v0  ;;  %v527_v33 = vld [vmem:[%s3774_s11 + $0x8] sm:$0xff]  ;;  %v526_v34 = vld [vmem:[%s3774_s11] sm:$0xff]  ;;  %s2854_s11 = sld [smem:[%s4322_s0 + %s3580_s8]]  }
 0x2f0   :  { %573 = vadd.xlane.f32.xlu1 %v572_v36  ;;  %v549_v37 = vpop.xlane.xlu0 %548  ;;  %3222 = vmatpush3.msra.mxu0 %v527_v33 }
 0x2f1   :  { %v555_v38 = vmul.f32 0.03125, %v549_v37  ;;  %v564_v39 = vmul.f32 %v3752_v35, %v3752_v35  ;;  %3223 = vmatprep.subr.mxu0 %v3546_v0 }
 0x2f2   :  { %3224 = vmatpush3.msra.mxu0 %v526_v34 }
 0x2f3   :  { %v3758_v40 = vsub.f32 %v3730_v17, %v555_v38  ;;  %v575_v41 = vsel %vm291_vm2, %v564_v39, 0.0  ;;  %3263 = vmatprep.subr.mxu0 %v3546_v0 }
 0x2f4   :  { %576 = vadd.xlane.f32.xlu0 %v575_v41 }
 0x2f5   :  { %v565_v42 = vmul.f32 %v3758_v40, %v3758_v40 }
 0x2f7   :  { %v578_v43 = vsel %vm291_vm2, %v565_v42, 0.0 }
 0x2f8   :  { %579 = vadd.xlane.f32.xlu1 %v578_v43 }
 0x371   :  { %v568_v53 = vpop.xlane.xlu1 %567 }
 0x372   :  { %v581_v54 = vmul.f32 0.03125, %v568_v53 }
 0x374   :  { %v586_v55 = vadd.f32 1e-05, %v581_v54 }
 0x375   :  { %v571_v56 = vpop.xlane.xlu0 %570 }
 0x376   :  { %3518 = vrsqrt.f32 %v586_v55  ;;  %v582_v57 = vmul.f32 0.03125, %v571_v56  ;;  %v2889_v56 = vld [vmem:[%s2842_s27] ss:$0 sm:$0xff]  ;;  %s2855_s27 = sld [smem:[%s4322_s0 + %s3584_s24]]  }
 0x378   :  { %v587_v58 = vadd.f32 1e-05, %v582_v57 }
 0x379   :  { %v574_v59 = vpop.xlane.xlu1 %573 }
 0x37a   :  { %3520 = vrsqrt.f32 %v587_v58  ;;  %v583_v61 = vmul.f32 0.03125, %v574_v59 }
 0x37c   :  { %v588_v62 = vadd.f32 1e-05, %v583_v61 }
 0x37d   :  { %v577_v63 = vpop.xlane.xlu0 %576 }
 0x37e   :  { %3522 = vrsqrt.f32 %v588_v62  ;;  %v584_v1 = vmul.f32 0.03125, %v577_v63 }
 0x380   :  { %v589_v3 = vadd.f32 1e-05, %v584_v1 }
 0x381   :  { %v580_v4 = vpop.xlane.xlu1 %579 }
 0x382   :  { %3524 = vrsqrt.f32 %v589_v3  ;;  %v585_v5 = vmul.f32 0.03125, %v580_v4 }
 0x383   :  { %v3519_v6 = vpop.eup %3518 }
 0x384   :  { %v596_v9 = vmul.f32 %v3519_v6, %v3735_v21  ;;  %v590_v10 = vadd.f32 1e-05, %v585_v5 }
 0x386   :  { %v607_v13 = vmul.f32 %v2881_v8, %v596_v9  ;;  %3526 = vrsqrt.f32 %v590_v10 }
 0x387   :  { %v3521_v14 = vpop.eup %3520 }
 0x388   :  { %v618_v15 = vadd.f32 %v2882_v11, %v607_v13  ;;  %v597_v16 = vmul.f32 %v3521_v14, %v3740_v25 }
 0x38a   :  { %3195 = vmatmul.mubr.msk.f32.vlgmr.msra.gmra.mxu1 %vm291_vm2, %v618_v15  ;;  %v608_v18 = vmul.f32 %v2881_v8, %v597_v16 }
 0x38b   :  { %v3523_v19 = vpop.eup %3522  ;;  %3197 = vmatprep.mubr.msk.f32.mxu1 %vm3548_vm0, %v3546_v0 }
 0x38c   :  { %v619_v20 = vadd.f32 %v2882_v11, %v608_v18  ;;  %v598_v22 = vmul.f32 %v3523_v19, %v3746_v30 }
 0x38e   :  { %3198 = vmatmul.mubr.msk.f32.gmra.mxu1 %vm291_vm2, %v619_v20  ;;  %v609_v21 = vmul.f32 %v2881_v8, %v598_v22 }
 0x38f   :  { %v3525_v23 = vpop.eup %3524  ;;  %3200 = vmatprep.mubr.msk.f32.mxu1 %vm3548_vm0, %v3546_v0 }
 0x390   :  { %v620_v24 = vadd.f32 %v2882_v11, %v609_v21  ;;  %v599_v25 = vmul.f32 %v3525_v23, %v3752_v35  ;;  %v2883_v35 = vld [vmem:[%s2840_s23] ss:$0 sm:$0xff]  ;;  %s2853_s23 = sld [smem:[%s4322_s0 + %s3583_s20]]  }
 0x392   :  { %3201 = vmatmul.mubr.msk.f32.gmra.mxu1 %vm291_vm2, %v620_v24  ;;  %v610_v26 = vmul.f32 %v2881_v8, %v599_v25 }
 0x393   :  { %v3527_v27 = vpop.eup %3526  ;;  %3203 = vmatprep.mubr.msk.f32.mxu1 %vm3548_vm0, %v3546_v0 }
 0x394   :  { %v621_v28 = vadd.f32 %v2882_v11, %v610_v26  ;;  %v600_v29 = vmul.f32 %v3527_v27, %v3758_v40 }
 0x396   :  { %3204 = vmatmul.mubr.msk.f32.gmra.mxu1 %vm291_vm2, %v621_v28  ;;  %v611_v30 = vmul.f32 %v2881_v8, %v600_v29 }
 0x397   :  { %3206 = vmatprep.mubr.msk.f32.mxu1 %vm3548_vm0, %v3546_v0 }
 0x398   :  { %v622_v31 = vadd.f32 %v2882_v11, %v611_v30 }
 0x39a   :  { %3207 = vmatmul.mubr.msk.f32.gmra.mxu1 %vm291_vm2, %v622_v31 }
 0x39b   :  { %3248 = vmatprep.mubr.msk.f32.mxu1 %vm3548_vm0, %v3546_v0 }
 0x44a   :  { %v710_v36 = vpop.f32.mrf.mxu1 }
 0x44b   :  { %v711_v37 = vadd.f32 %v2883_v35, %v710_v36 }
 0x44c   :  { %v3196_v38 = vpop.f32.mrf.mxu1 }
 0x44d   :  { %v734_v39 = vmax.f32 %v711_v37, 0.0 }
 0x44e   :  { %v715_v40 = vpop.f32.mrf.mxu1 }
 0x44f   :  { %v716_v41 = vadd.f32 %v2883_v35, %v715_v40  ;;  %3226 = vmatmul.mubr.msk.f32.vlgmr.msra.gmra.mxu0 %vm408_vm3, %v734_v39 }
 0x450   :  { %v3199_v42 = vpop.f32.mrf.mxu1  ;;  %3228 = vmatprep.mubr.msk.f32.mxu0 %vm3548_vm0, %v3546_v0 }
 0x451   :  { %v735_v43 = vmax.f32 %v716_v41, 0.0 }
 0x452   :  { %v720_v44 = vpop.f32.mrf.mxu1 }
 0x453   :  { %v721_v45 = vadd.f32 %v2883_v35, %v720_v44  ;;  %3229 = vmatmul.mubr.msk.f32.gmra.mxu0 %vm408_vm3, %v735_v43  ;;  %v947_v44 = vld [vmem:[%s2845_s1 + $0x18] sm:$0xff] }
 0x454   :  { %v3202_v46 = vpop.f32.mrf.mxu1  ;;  %3231 = vmatprep.mubr.msk.f32.mxu0 %vm3548_vm0, %v3546_v0  ;;  %3241 = vmatpush3.msra.mxu1 %v947_v44 }
 0x455   :  { %v736_v47 = vmax.f32 %v721_v45, 0.0  ;;  %3242 = vmatprep.subr.mxu1 %v3546_v0  ;;  %v946_v45 = vld [vmem:[%s2845_s1 + $0x10] sm:$0xff]  ;;  %v945_v46 = vld [vmem:[%s2845_s1 + $0x8] sm:$0xff] }
 0x456   :  { %v725_v48 = vpop.f32.mrf.mxu1  ;;  %3243 = vmatpush3.msra.mxu1 %v946_v45  ;;  %v3565_v45 = vmov 1.0  }
 0x457   :  { %v726_v49 = vadd.f32 %v2883_v35, %v725_v48  ;;  %3232 = vmatmul.mubr.msk.f32.gmra.mxu0 %vm408_vm3, %v736_v47  ;;  %3244 = vmatprep.subr.mxu1 %v3546_v0  ;;  %v944_v47 = vld [vmem:[%s2845_s1] sm:$0xff]  ;;  %s2857_s1 = sld [smem:[%s4322_s0 + %s3585_s28]]  }
 0x458   :  { %v3205_v50 = vpop.f32.mrf.mxu1  ;;  %3234 = vmatprep.mubr.msk.f32.mxu0 %vm3548_vm0, %v3546_v0  ;;  %3245 = vmatpush3.msra.mxu1 %v945_v46  ;;  %v1240_v46 = vlaneseq }
 0x459   :  { %v737_v51 = vmax.f32 %v726_v49, 0.0  ;;  %3246 = vmatprep.subr.mxu1 %v3546_v0 }
 0x45a   :  { %v730_v52 = vpop.f32.mrf.mxu1  ;;  %3247 = vmatpush3.msra.mxu1 %v944_v47  ;;  %v1241_v47 = vshrl.u32 %v1240_v46, 7 }
 0x45b   :  { %v731_v53 = vadd.f32 %v2883_v35, %v730_v52  ;;  %3235 = vmatmul.mubr.msk.f32.gmra.mxu0 %vm408_vm3, %v737_v51  ;;  %3274 = vmatprep.subr.mxu1 %v3546_v0 }
 0x45c   :  { %v3208_v54 = vpop.f32.mrf.mxu1  ;;  %3237 = vmatprep.mubr.msk.f32.mxu0 %vm3548_vm0, %v3546_v0 }
 0x45d   :  { %v738_v55 = vmax.f32 %v731_v53, 0.0 }
 0x45f   :  { %3238 = vmatmul.mubr.msk.f32.gmra.mxu0 %vm408_vm3, %v738_v55 }
 0x460   :  { %3271 = vmatprep.mubr.msk.f32.mxu0 %vm3548_vm0, %v3546_v0 }
 0x50f   :  { %v826_v57 = vpop.f32.mrf.mxu0 }
 0x510   :  { %v827_v58 = vadd.f32 %v2889_v56, %v826_v57 }
 0x511   :  { %v3227_v59 = vpop.f32.mrf.mxu0 }
 0x512   :  { %v3840_v61 = vadd.f32 %v827_v58, %v3710_v60 }
 0x513   :  { %v831_v62 = vpop.f32.mrf.mxu0 }
 0x514   :  { %v832_v63 = vadd.f32 %v2889_v56, %v831_v62  ;;  %v857_v1 = vsel %vm291_vm2, %v3840_v61, 0.0 }
 0x515   :  { %858 = vadd.xlane.f32.xlu0 %v857_v1  ;;  %v3230_v3 = vpop.f32.mrf.mxu0 }
 0x516   :  { %v851_v4 = vadd.f32 %v832_v63, %v3715_v2  ;;  %v2895_v3 = vld [vmem:[%s2843_s5] ss:$0 sm:$0xff]  ;;  %s2860_s5 = sld [smem:[%s4322_s0 + %s3586_s2]]  }
 0x517   :  { %v836_v5 = vpop.f32.mrf.mxu0 }
 0x518   :  { %v837_v6 = vadd.f32 %v2889_v56, %v836_v5  ;;  %v860_v8 = vsel %vm291_vm2, %v851_v4, 0.0 }
 0x519   :  { %861 = vadd.xlane.f32.xlu1 %v860_v8  ;;  %v3233_v9 = vpop.f32.mrf.mxu0 }
 0x51a   :  { %v852_v10 = vadd.f32 %v837_v6, %v3720_v7  ;;  %v2896_v6 = vld [vmem:[%s2844_s9] ss:$0 sm:$0xff]  ;;  %s2861_s9 = sld [smem:[%s4322_s0 + %s3587_s6]]  }
 0x51b   :  { %v841_v11 = vpop.f32.mrf.mxu0 }
 0x51c   :  { %v842_v60 = vadd.f32 %v2889_v56, %v841_v11  ;;  %v863_v13 = vsel %vm291_vm2, %v852_v10, 0.0 }
 0x51d   :  { %864 = vadd.xlane.f32.xlu0 %v863_v13  ;;  %v3236_v14 = vpop.f32.mrf.mxu0 }
 0x51e   :  { %v853_v15 = vadd.f32 %v842_v60, %v3725_v12 }
 0x51f   :  { %v846_v16 = vpop.f32.mrf.mxu0 }
 0x520   :  { %v847_v18 = vadd.f32 %v2889_v56, %v846_v16  ;;  %v866_v2 = vsel %vm291_vm2, %v853_v15, 0.0 }
 0x521   :  { %867 = vadd.xlane.f32.xlu1 %v866_v2  ;;  %v3239_v19 = vpop.f32.mrf.mxu0 }
 0x522   :  { %v854_v20 = vadd.f32 %v847_v18, %v3730_v17 }
 0x524   :  { %v869_v22 = vsel %vm291_vm2, %v854_v20, 0.0 }
 0x525   :  { %870 = vadd.xlane.f32.xlu0 %v869_v22 }
 0x59e   :  { %v859_v7 = vpop.xlane.xlu0 %858 }
 0x59f   :  { %v872_v21 = vmul.f32 0.03125, %v859_v7 }
 0x5a1   :  { %v3853_v23 = vsub.f32 %v3840_v61, %v872_v21 }
 0x5a2   :  { %v862_v24 = vpop.xlane.xlu1 %861 }
 0x5a3   :  { %v873_v25 = vmul.f32 0.03125, %v862_v24  ;;  %v882_v12 = vmul.f32 %v3853_v23, %v3853_v23 }
 0x5a5   :  { %v3857_v26 = vsub.f32 %v851_v4, %v873_v25  ;;  %v887_v27 = vsel %vm291_vm2, %v882_v12, 0.0  ;;  %v2897_v25 = vld [vmem:[%s2846_s13] ss:$0 sm:$0xff]  ;;  %s2858_s13 = sld [smem:[%s4322_s0 + %s3588_s10]]  }
 0x5a6   :  { %v865_v28 = vpop.xlane.xlu0 %864  ;;  %888 = vadd.xlane.f32.xlu1 %v887_v27 }
 0x5a7   :  { %v874_v17 = vmul.f32 0.03125, %v865_v28  ;;  %v883_v29 = vmul.f32 %v3857_v26, %v3857_v26 }
 0x5a9   :  { %v3862_v30 = vsub.f32 %v852_v10, %v874_v17  ;;  %v890_v31 = vsel %vm291_vm2, %v883_v29, 0.0 }
 0x5aa   :  { %v868_v32 = vpop.xlane.xlu1 %867  ;;  %891 = vadd.xlane.f32.xlu0 %v890_v31 }
 0x5ab   :  { %v875_v33 = vmul.f32 0.03125, %v868_v32  ;;  %v884_v34 = vmul.f32 %v3862_v30, %v3862_v30 }
 0x5ad   :  { %v3867_v35 = vsub.f32 %v853_v15, %v875_v33  ;;  %v893_v36 = vsel %vm291_vm2, %v884_v34, 0.0 }
 0x5ae   :  { %894 = vadd.xlane.f32.xlu1 %v893_v36  ;;  %v871_v37 = vpop.xlane.xlu0 %870 }
 0x5af   :  { %v876_v38 = vmul.f32 0.03125, %v871_v37  ;;  %v885_v39 = vmul.f32 %v3867_v35, %v3867_v35 }
 0x5b1   :  { %v3872_v40 = vsub.f32 %v854_v20, %v876_v38  ;;  %v896_v41 = vsel %vm291_vm2, %v885_v39, 0.0 }
 0x5b2   :  { %897 = vadd.xlane.f32.xlu0 %v896_v41 }
 0x5b3   :  { %v886_v42 = vmul.f32 %v3872_v40, %v3872_v40 }
 0x5b5   :  { %v899_v43 = vsel %vm291_vm2, %v886_v42, 0.0 }
 0x5b6   :  { %900 = vadd.xlane.f32.xlu1 %v899_v43 }
 0x62f   :  { %v889_v48 = vpop.xlane.xlu1 %888 }
 0x630   :  { %v902_v49 = vmul.f32 0.03125, %v889_v48  ;;  %v1242_v48 = vsub.s32 0, %v1241_v47 }
 0x632   :  { %v907_v50 = vadd.f32 1e-05, %v902_v49 }
 0x633   :  { %v892_v51 = vpop.xlane.xlu0 %891 }
 0x634   :  { %3528 = vrsqrt.f32 %v907_v50  ;;  %v903_v52 = vmul.f32 0.03125, %v892_v51 }
 0x636   :  { %v908_v53 = vadd.f32 1e-05, %v903_v52 }
 0x637   :  { %v895_v54 = vpop.xlane.xlu1 %894 }
 0x638   :  { %3530 = vrsqrt.f32 %v908_v53  ;;  %v904_v55 = vmul.f32 0.03125, %v895_v54 }
 0x63a   :  { %v909_v56 = vadd.f32 1e-05, %v904_v55 }
 0x63b   :  { %v898_v57 = vpop.xlane.xlu0 %897 }
 0x63c   :  { %3532 = vrsqrt.f32 %v909_v56  ;;  %v905_v58 = vmul.f32 0.03125, %v898_v57 }
 0x63e   :  { %v910_v59 = vadd.f32 1e-05, %v905_v58 }
 0x63f   :  { %v901_v62 = vpop.xlane.xlu1 %900 }
 0x640   :  { %3534 = vrsqrt.f32 %v910_v59  ;;  %v906_v63 = vmul.f32 0.03125, %v901_v62  ;;  %v3979_v59 = vand.u32 127, %v1240_v46 }
 0x641   :  { %v3529_v1 = vpop.eup %3528 }
 0x642   :  { %v917_v4 = vmul.f32 %v3529_v1, %v3853_v23  ;;  %v911_v5 = vadd.f32 1e-05, %v906_v63 }
 0x644   :  { %v928_v8 = vmul.f32 %v2895_v3, %v917_v4  ;;  %3536 = vrsqrt.f32 %v911_v5 }
 0x645   :  { %v3531_v9 = vpop.eup %3530 }
 0x646   :  { %v939_v10 = vadd.f32 %v2896_v6, %v928_v8  ;;  %v918_v11 = vmul.f32 %v3531_v9, %v3857_v26 }
 0x648   :  { %3249 = vmatmul.mubr.msk.f32.vlgmr.msra.gmra.mxu1 %vm291_vm2, %v939_v10  ;;  %v929_v60 = vmul.f32 %v2895_v3, %v918_v11 }
 0x649   :  { %v3533_v13 = vpop.eup %3532  ;;  %3251 = vmatprep.mubr.msk.f32.mxu1 %vm3548_vm0, %v3546_v0 }
 0x64a   :  { %v940_v14 = vadd.f32 %v2896_v6, %v929_v60  ;;  %v919_v15 = vmul.f32 %v3533_v13, %v3862_v30 }
 0x64c   :  { %3252 = vmatmul.mubr.msk.f32.gmra.mxu1 %vm291_vm2, %v940_v14  ;;  %v930_v16 = vmul.f32 %v2895_v3, %v919_v15 }
 0x64d   :  { %v3535_v18 = vpop.eup %3534  ;;  %3254 = vmatprep.mubr.msk.f32.mxu1 %vm3548_vm0, %v3546_v0 }
 0x64e   :  { %v941_v2 = vadd.f32 %v2896_v6, %v930_v16  ;;  %v920_v19 = vmul.f32 %v3535_v18, %v3867_v35 }
 0x650   :  { %3255 = vmatmul.mubr.msk.f32.gmra.mxu1 %vm291_vm2, %v941_v2  ;;  %v931_v20 = vmul.f32 %v2895_v3, %v920_v19 }
 0x651   :  { %v3537_v22 = vpop.eup %3536  ;;  %3257 = vmatprep.mubr.msk.f32.mxu1 %vm3548_vm0, %v3546_v0 }
 0x652   :  { %v942_v7 = vadd.f32 %v2896_v6, %v931_v20  ;;  %v921_v21 = vmul.f32 %v3537_v22, %v3872_v40 }
 0x654   :  { %3258 = vmatmul.mubr.msk.f32.gmra.mxu1 %vm291_vm2, %v942_v7  ;;  %v932_v23 = vmul.f32 %v2895_v3, %v921_v21 }
 0x655   :  { %3260 = vmatprep.mubr.msk.f32.mxu1 %vm3548_vm0, %v3546_v0 }
 0x656   :  { %v943_v24 = vadd.f32 %v2896_v6, %v932_v23 }
 0x658   :  { %3261 = vmatmul.mubr.msk.f32.gmra.mxu1 %vm291_vm2, %v943_v24 }
 0x659   :  { %3282 = vmatprep.mubr.msk.f32.mxu1 %vm3548_vm0, %v3546_v0 }
 0x708   :  { %v1036_v12 = vpop.f32.mrf.mxu1 }
 0x709   :  { %v3914_v26 = vadd.f32 %v2897_v25, %v1036_v12 }
 0x70a   :  { %v3250_v27 = vpop.f32.mrf.mxu1 }
 0x70b   :  { %v1145_v28 = vmul.f32 %v3914_v26, %v3914_v26 }
 0x70c   :  { %v1041_v17 = vpop.f32.mrf.mxu1 }
 0x70d   :  { %v1146_v29 = vsel %vm291_vm2, %v1145_v28, 0.0  ;;  %v3939_v42 = vadd.f32 %v2897_v25, %v1041_v17 }
 0x70e   :  { %1147 = vadd.xlane.f32.xlu0 %v1146_v29  ;;  %v3253_v30 = vpop.f32.mrf.mxu1 }
 0x70f   :  { %v1149_v44 = vmul.f32 %v3939_v42, %v3939_v42 }
 0x710   :  { %v1046_v31 = vpop.f32.mrf.mxu1 }
 0x711   :  { %v3930_v40 = vadd.f32 %v2897_v25, %v1046_v31 }
 0x712   :  { %v3256_v32 = vpop.f32.mrf.mxu1 }
 0x713   :  { %v1150_v43 = vmul.f32 %v3930_v40, %v3930_v40 }
 0x714   :  { %v1051_v33 = vpop.f32.mrf.mxu1 }
 0x715   :  { %v3921_v38 = vadd.f32 %v2897_v25, %v1051_v33 }
 0x716   :  { %v3259_v34 = vpop.f32.mrf.mxu1 }
 0x717   :  { %v1151_v41 = vmul.f32 %v3921_v38, %v3921_v38 }
 0x718   :  { %v1056_v35 = vpop.f32.mrf.mxu1 }
 0x719   :  { %v3919_v36 = vadd.f32 %v2897_v25, %v1056_v35 }
 0x71a   :  { %v3262_v37 = vpop.f32.mrf.mxu1 }
 0x71b   :  { %3264 = vmatpush3.xpose.msk.msra.mxu0 %vm291_vm2, %v3919_v36  ;;  %v1152_v39 = vmul.f32 %v3919_v36, %v3919_v36 }
 0x71c   :  { %3265 = vmatprep.subr.mxu0 %v3546_v0 }
 0x71d   :  { %3275 = vmatpush3.xpose.msk.msra.mxu1 %vm291_vm2, %v1152_v39 }
 0x71e   :  { %3276 = vmatprep.subr.mxu1 %v3546_v0 }
 0x71f   :  { %3266 = vmatpush3.xpose.msk.msra.mxu0 %vm291_vm2, %v3921_v38 }
 0x720   :  { %3267 = vmatprep.subr.mxu0 %v3546_v0 }
 0x721   :  { %3277 = vmatpush3.xpose.msk.msra.mxu1 %vm291_vm2, %v1151_v41 }
 0x722   :  { %3278 = vmatprep.subr.mxu1 %v3546_v0 }
 0x723   :  { %3268 = vmatpush3.xpose.msk.msra.mxu0 %vm291_vm2, %v3930_v40 }
 0x724   :  { %3269 = vmatprep.subr.mxu0 %v3546_v0 }
 0x725   :  { %3279 = vmatpush3.xpose.msk.msra.mxu1 %vm291_vm2, %v1150_v43 }
 0x726   :  { %3280 = vmatprep.subr.mxu1 %v3546_v0 }
 0x727   :  { %3270 = vmatpush3.xpose.msk.msra.mxu0 %vm291_vm2, %v3939_v42 }
 0x728   :  { %3285 = vmatprep.subr.mxu0 %v3546_v0 }
 0x729   :  { %3281 = vmatpush3.xpose.msk.msra.mxu1 %vm291_vm2, %v1149_v44 }
 0x72a   :  { %3272 = vmatmul.mubr.msk.f32.vlgmr.msra.gmra.mxu0 %vm291_vm2, %v3914_v26  ;;  %3296 = vmatprep.subr.mxu1 %v3546_v0 }
 0x72b   :  { %3286 = vmatpush3.msra.mxu0 %v3919_v36  ;;  %3293 = vmatprep.mubr.msk.f32.mxu0 %vm3548_vm0, %v3546_v0 }
 0x72c   :  { %3283 = vmatmul.mubr.msk.f32.vlgmr.msra.gmra.mxu1 %vm291_vm2, %v3565_v45  ;;  %3287 = vmatprep.subr.mxu0 %v3546_v0 }
 0x72d   :  { %3288 = vmatpush3.msra.mxu0 %v3921_v38  ;;  %3297 = vmatpush3.msra.mxu1 %v3919_v36 }
 0x72e   :  { %3289 = vmatprep.subr.mxu0 %v3546_v0  ;;  %3298 = vmatprep.subr.mxu1 %v3546_v0 }
 0x72f   :  { %3290 = vmatpush3.msra.mxu0 %v3930_v40  ;;  %3299 = vmatpush3.msra.mxu1 %v3921_v38 }
 0x730   :  { %3291 = vmatprep.subr.mxu0 %v3546_v0  ;;  %3300 = vmatprep.subr.mxu1 %v3546_v0 }
 0x731   :  { %3292 = vmatpush3.msra.mxu0 %v3939_v42  ;;  %3301 = vmatpush3.msra.mxu1 %v3930_v40 }
 0x732   :  { %3302 = vmatprep.subr.mxu1 %v3546_v0  ;;  %3307 = vmatprep.subr.mxu0 %v3546_v0 }
 0x733   :  { %3303 = vmatpush3.msra.mxu1 %v3939_v42  ;;  %3304 = vmatprep.mubr.msk.f32.mxu1 %vm3548_vm0, %v3546_v0 }
 0x734   :  { %3318 = vmatprep.subr.mxu1 %v3546_v0 }
 0x797   :  { %v1148_v50 = vpop.xlane.xlu0 %1147 }
 0x7ea   :  { %v1141_v49 = vpop.f32.mrf.mxu0 }
 0x7eb   :  { %v1238_v51 = vmul.f32 2.0, %v1141_v49 }
 0x7ec   :  { %v3273_v52 = vpop.f32.mrf.mxu0  ;;  %v1234_v53 = vpop.f32.mrf.mxu1 }
 0x7ed   :  { %v1239_v54 = vsub.f32 %v1238_v51, %v1148_v50  ;;  %v1243_v55 = vrot.slane %v1234_v53, %v1242_v48 }
 0x7ee   :  { %v3284_v56 = vpop.f32.mrf.mxu1 }
 0x7ef   :  { %v1244_v57 = vsub.f32 %v1239_v54, %v1243_v55 }
 0x7f1   :  { %v1248_v58 = vsel %vm291_vm2, %v1244_v57, -inf }
 0x7f2   :  { %1249 = vmax.xlane.f32.xlu1 %v1248_v58 }
 0x87b   :  { %v3981_v62 = vpop.xlane.xlu1 %1249 }
 0x87c   :  { %vm1251_vm4 = vcmp.eq.f32.partialorder %v1244_v57, %v3981_v62 }
 0x87d   :  { %v1252_v63 = vsel %vm1251_vm4, %v3979_v59, 32 }
 0x87e   :  { %v1253_v1 = vsel %vm291_vm2, %v1252_v63, 2147483647 }
 0x87f   :  { %v1255_v3 = vshra.s32 %v1253_v1, 16  ;;  %v1254_v5 = vand.u32 65535, %v1253_v1 }
 0x881   :  { %v1257_v4 = vcvt.s32.f32 %v1255_v3  ;;  %v1256_v8 = vcvt.s32.f32 %v1254_v5 }
 0x883   :  { %1258 = vmin.xlane.f32.xlu0 %v1257_v4 }
 0x90c   :  { %v1259_v6 = vpop.xlane.xlu0 %1258 }
 0x90d   :  { %vm1260_vm5 = vcmp.eq.f32.partialorder %v1257_v4, %v1259_v6  ;;  %v1265_v10 = vcvt.f32.s32 %v1259_v6 }
 0x90e   :  { %v1261_v9 = vsel %vm1260_vm5, %v1256_v8, inf }
 0x90f   :  { %1262 = vmin.xlane.f32.xlu1 %v1261_v9  ;;  %v1266_v60 = vshll.u32 %v1265_v10, 16 }
 0x998   :  { %v1263_v11 = vpop.xlane.xlu1 %1262 }
 0x999   :  { %v1264_v13 = vcvt.f32.s32 %v1263_v11 }
 0x99b   :  { %v1267_v14 = vadd.s32 %v1266_v60, %v1264_v13 }
 0x99d   :  { %vm1268_vm6 = vcmp.eq.s32.totalorder %v3979_v59, %v1267_v14 }
 0x99e   :  { %v3988_v15 = vsel %vm1268_vm6, 1.0, %v3546_v0  ;;  %v1355_v16 = vsel %vm1268_vm6, -inf, %v1244_v57 }
 0x99f   :  { %3294 = vmatmul.mubr.msk.f32.vlgmr.msra.gmra.mxu0 %vm291_vm2, %v3988_v15  ;;  %v1356_v18 = vsel %vm291_vm2, %v1355_v16, -inf }
 0x9a0   :  { %3308 = vmatpush3.msra.mxu0 %v3919_v36  ;;  %1357 = vmax.xlane.f32.xlu0 %v1356_v18 }
 0x9a1   :  { %3309 = vmatprep.subr.mxu0 %v3546_v0  ;;  %3315 = vmatprep.mubr.msk.f32.mxu0 %vm3548_vm0, %v3546_v0 }
 0x9a2   :  { %3310 = vmatpush3.msra.mxu0 %v3921_v38 }
 0x9a3   :  { %3311 = vmatprep.subr.mxu0 %v3546_v0 }
 0x9a4   :  { %3312 = vmatpush3.msra.mxu0 %v3930_v40 }
 0x9a5   :  { %3313 = vmatprep.subr.mxu0 %v3546_v0 }
 0x9a6   :  { %3314 = vmatpush3.msra.mxu0 %v3939_v42 }
 0x9a7   :  { %3329 = vmatprep.subr.mxu0 %v3546_v0 }
 0xa29   :  { %v4003_v2 = vpop.xlane.xlu0 %1357 }
 0xa2a   :  { %vm1359_vm7 = vcmp.eq.f32.partialorder %v1355_v16, %v4003_v2 }
 0xa2b   :  { %v1360_v19 = vsel %vm1359_vm7, %v3979_v59, 32 }
 0xa2c   :  { %v1361_v20 = vsel %vm291_vm2, %v1360_v19, 2147483647 }
 0xa2d   :  { %v1363_v22 = vshra.s32 %v1361_v20, 16  ;;  %v1362_v24 = vand.u32 65535, %v1361_v20 }
 0xa2f   :  { %v1365_v7 = vcvt.s32.f32 %v1363_v22  ;;  %v1364_v12 = vcvt.s32.f32 %v1362_v24 }
 0xa31   :  { %1366 = vmin.xlane.f32.xlu1 %v1365_v7 }
 0xa5f   :  { %v4008_v21 = vpop.f32.mrf.mxu0 }
 0xa61   :  { %v3295_v23 = vpop.f32.mrf.mxu0 }
 0xaba   :  { %v1367_v25 = vpop.xlane.xlu1 %1366 }
 0xabb   :  { %vm1368_vm8 = vcmp.eq.f32.partialorder %v1365_v7, %v1367_v25  ;;  %v1373_v28 = vcvt.f32.s32 %v1367_v25 }
 0xabc   :  { %v1369_v27 = vsel %vm1368_vm8, %v1364_v12, inf }
 0xabd   :  { %1370 = vmin.xlane.f32.xlu0 %v1369_v27  ;;  %v1374_v29 = vshll.u32 %v1373_v28, 16 }
 0xb46   :  { %v1371_v17 = vpop.xlane.xlu0 %1370 }
 0xb47   :  { %v1372_v30 = vcvt.f32.s32 %v1371_v17 }
 0xb49   :  { %v1375_v31 = vadd.s32 %v1374_v29, %v1372_v30 }
 0xb4b   :  { %vm1376_vm9 = vcmp.eq.s32.totalorder %v3979_v59, %v1375_v31 }
 0xb4c   :  { %v4012_v32 = vsel %vm1376_vm9, 1.0, %v3546_v0  ;;  %v1457_v33 = vsel %vm1376_vm9, -inf, %v1355_v16 }
 0xb4d   :  { %3305 = vmatmul.mubr.msk.f32.vlgmr.msra.gmra.mxu1 %vm291_vm2, %v4012_v32  ;;  %v1458_v34 = vsel %vm291_vm2, %v1457_v33, -inf }
 0xb4e   :  { %3319 = vmatpush3.msra.mxu1 %v3919_v36  ;;  %1459 = vmax.xlane.f32.xlu1 %v1458_v34 }
 0xb4f   :  { %3320 = vmatprep.subr.mxu1 %v3546_v0  ;;  %3326 = vmatprep.mubr.msk.f32.mxu1 %vm3548_vm0, %v3546_v0 }
 0xb50   :  { %3321 = vmatpush3.msra.mxu1 %v3921_v38 }
 0xb51   :  { %3322 = vmatprep.subr.mxu1 %v3546_v0 }
 0xb52   :  { %3323 = vmatpush3.msra.mxu1 %v3930_v40 }
 0xb53   :  { %3324 = vmatprep.subr.mxu1 %v3546_v0 }
 0xb54   :  { %3325 = vmatpush3.msra.mxu1 %v3939_v42 }
 0xb55   :  { %3340 = vmatprep.subr.mxu1 %v3546_v0 }
 0xbd7   :  { %v4027_v35 = vpop.xlane.xlu1 %1459 }
 0xbd8   :  { %vm1461_vm10 = vcmp.eq.f32.partialorder %v1457_v33, %v4027_v35 }
 0xbd9   :  { %v1462_v37 = vsel %vm1461_vm10, %v3979_v59, 32 }
 0xbda   :  { %v1463_v39 = vsel %vm291_vm2, %v1462_v37, 2147483647 }
 0xbdb   :  { %v1465_v41 = vshra.s32 %v1463_v39, 16  ;;  %v1464_v46 = vand.u32 65535, %v1463_v39 }
 0xbdd   :  { %v1467_v43 = vcvt.s32.f32 %v1465_v41  ;;  %v1466_v48 = vcvt.s32.f32 %v1464_v46 }
 0xbdf   :  { %1468 = vmin.xlane.f32.xlu0 %v1467_v43 }
 0xc0d   :  { %v4032_v44 = vpop.f32.mrf.mxu1 }
 0xc0f   :  { %v3306_v45 = vpop.f32.mrf.mxu1 }
 0xc68   :  { %v1469_v47 = vpop.xlane.xlu0 %1468 }
 0xc69   :  { %vm1470_vm11 = vcmp.eq.f32.partialorder %v1467_v43, %v1469_v47  ;;  %v1475_v50 = vcvt.f32.s32 %v1469_v47 }
 0xc6a   :  { %v1471_v49 = vsel %vm1470_vm11, %v1466_v48, inf }
 0xc6b   :  { %1472 = vmin.xlane.f32.xlu1 %v1471_v49  ;;  %v1476_v52 = vshll.u32 %v1475_v50, 16 }
 0xcf4   :  { %v1473_v51 = vpop.xlane.xlu1 %1472 }
 0xcf5   :  { %v1474_v53 = vcvt.f32.s32 %v1473_v51 }
 0xcf7   :  { %v1477_v54 = vadd.s32 %v1476_v52, %v1474_v53 }
 0xcf9   :  { %vm1478_vm12 = vcmp.eq.s32.totalorder %v3979_v59, %v1477_v54 }
 0xcfa   :  { %v4036_v55 = vsel %vm1478_vm12, 1.0, %v3546_v0  ;;  %v1559_v56 = vsel %vm1478_vm12, -inf, %v1457_v33 }
 0xcfb   :  { %3316 = vmatmul.mubr.msk.f32.vlgmr.msra.gmra.mxu0 %vm291_vm2, %v4036_v55  ;;  %v1560_v57 = vsel %vm291_vm2, %v1559_v56, -inf }
 0xcfc   :  { %3330 = vmatpush3.msra.mxu0 %v3919_v36  ;;  %1561 = vmax.xlane.f32.xlu0 %v1560_v57 }
 0xcfd   :  { %3331 = vmatprep.subr.mxu0 %v3546_v0  ;;  %3337 = vmatprep.mubr.msk.f32.mxu0 %vm3548_vm0, %v3546_v0 }
 0xcfe   :  { %3332 = vmatpush3.msra.mxu0 %v3921_v38 }
 0xcff   :  { %3333 = vmatprep.subr.mxu0 %v3546_v0 }
 0xd00   :  { %3334 = vmatpush3.msra.mxu0 %v3930_v40 }
 0xd01   :  { %3335 = vmatprep.subr.mxu0 %v3546_v0 }
 0xd02   :  { %3336 = vmatpush3.msra.mxu0 %v3939_v42 }
 0xd03   :  { %3351 = vmatprep.subr.mxu0 %v3546_v0 }
 0xd85   :  { %v4051_v58 = vpop.xlane.xlu0 %1561 }
 0xd86   :  { %vm1563_vm13 = vcmp.eq.f32.partialorder %v1559_v56, %v4051_v58 }
 0xd87   :  { %v1564_v63 = vsel %vm1563_vm13, %v3979_v59, 32  ;;  %vm2069_vm13 = vcmask 7168  }
 0xd88   :  { %v1565_v1 = vsel %vm291_vm2, %v1564_v63, 2147483647 }
 0xd89   :  { %v1567_v3 = vshra.s32 %v1565_v1, 16  ;;  %v1566_v8 = vand.u32 65535, %v1565_v1 }
 0xd8b   :  { %v1569_v4 = vcvt.s32.f32 %v1567_v3  ;;  %v1568_v10 = vcvt.s32.f32 %v1566_v8 }
 0xd8d   :  { %1570 = vmin.xlane.f32.xlu1 %v1569_v4 }
 0xdbb   :  { %v4056_v5 = vpop.f32.mrf.mxu0 }
 0xdbd   :  { %v3317_v6 = vpop.f32.mrf.mxu0 }
 0xe16   :  { %v1571_v9 = vpop.xlane.xlu1 %1570 }
 0xe17   :  { %vm1572_vm14 = vcmp.eq.f32.partialorder %v1569_v4, %v1571_v9  ;;  %v1577_v60 = vcvt.f32.s32 %v1571_v9 }
 0xe18   :  { %v1573_v11 = vsel %vm1572_vm14, %v1568_v10, inf  ;;  %vm2071_vm14 = vcmask 15360  }
 0xe19   :  { %1574 = vmin.xlane.f32.xlu0 %v1573_v11  ;;  %v1578_v14 = vshll.u32 %v1577_v60, 16 }
 0xea2   :  { %v1575_v13 = vpop.xlane.xlu0 %1574 }
 0xea3   :  { %v1576_v16 = vcvt.f32.s32 %v1575_v13 }
 0xea5   :  { %v1579_v18 = vadd.s32 %v1578_v14, %v1576_v16 }
 0xea7   :  { %vm1580_vm15 = vcmp.eq.s32.totalorder %v3979_v59, %v1579_v18 }
 0xea8   :  { %v4060_v19 = vsel %vm1580_vm15, 1.0, %v3546_v0  ;;  %v1661_v20 = vsel %vm1580_vm15, -inf, %v1559_v56  ;;  %vm2073_vm15 = vcmask 23552  }
 0xea9   :  { %3327 = vmatmul.mubr.msk.f32.vlgmr.msra.gmra.mxu1 %vm291_vm2, %v4060_v19  ;;  %v1662_v22 = vsel %vm291_vm2, %v1661_v20, -inf }
 0xeaa   :  { %3341 = vmatpush3.msra.mxu1 %v3919_v36  ;;  %1663 = vmax.xlane.f32.xlu1 %v1662_v22 }
 0xeab   :  { %3342 = vmatprep.subr.mxu1 %v3546_v0  ;;  %3348 = vmatprep.mubr.msk.f32.mxu1 %vm3548_vm0, %v3546_v0 }
 0xeac   :  { %3343 = vmatpush3.msra.mxu1 %v3921_v38 }
 0xead   :  { %3344 = vmatprep.subr.mxu1 %v3546_v0 }
 0xeae   :  { %3345 = vmatpush3.msra.mxu1 %v3930_v40 }
 0xeaf   :  { %3346 = vmatprep.subr.mxu1 %v3546_v0 }
 0xeb0   :  { %3347 = vmatpush3.msra.mxu1 %v3939_v42 }
 0xeb1   :  { %3362 = vmatprep.subr.mxu1 %v3546_v0 }
 0xf33   :  { %v4075_v7 = vpop.xlane.xlu1 %1663 }
 0xf34   :  { %vm1665_vm4 = vcmp.eq.f32.partialorder %v1661_v20, %v4075_v7 }
 0xf35   :  { %v1666_v23 = vsel %vm1665_vm4, %v3979_v59, 32 }
 0xf36   :  { %v1667_v24 = vsel %vm291_vm2, %v1666_v23, 2147483647 }
 0xf37   :  { %v1669_v25 = vshra.s32 %v1667_v24, 16  ;;  %v1668_v17 = vand.u32 65535, %v1667_v24 }
 0xf39   :  { %v1671_v12 = vcvt.s32.f32 %v1669_v25  ;;  %v1670_v30 = vcvt.s32.f32 %v1668_v17 }
 0xf3b   :  { %1672 = vmin.xlane.f32.xlu0 %v1671_v12 }
 0xf69   :  { %v4080_v27 = vpop.f32.mrf.mxu1 }
 0xf6b   :  { %v3328_v28 = vpop.f32.mrf.mxu1 }
 0xfc4   :  { %v1673_v29 = vpop.xlane.xlu0 %1672 }
 0xfc5   :  { %vm1674_vm5 = vcmp.eq.f32.partialorder %v1671_v12, %v1673_v29  ;;  %v1679_v33 = vcvt.f32.s32 %v1673_v29 }
 0xfc6   :  { %v1675_v31 = vsel %vm1674_vm5, %v1670_v30, inf  ;;  %vm2075_vm5 = vcmask 31744  }
 0xfc7   :  { %1676 = vmin.xlane.f32.xlu1 %v1675_v31  ;;  %v1680_v37 = vshll.u32 %v1679_v33, 16  ;;  %v2155_v31 = vld [vmem:[%s2849_s17 + $0x10] sm:$0xff]  ;;  %v1354_v33 = vsub.f32 %v3914_v26, %v4008_v21  ;;  %v1558_v21 = vsub.f32 %v3914_v26, %v4056_v5 }
0x1050   :  { %v1677_v34 = vpop.xlane.xlu1 %1676 }
0x1051   :  { %v1678_v39 = vcvt.f32.s32 %v1677_v34 }
0x1053   :  { %v1681_v41 = vadd.s32 %v1680_v37, %v1678_v39  ;;  %v2154_v37 = vld [vmem:[%s2849_s17 + $0x8] sm:$0xff]  ;;  %v2153_v39 = vld [vmem:[%s2849_s17] sm:$0xff] }
0x1055   :  { %vm1682_vm6 = vcmp.eq.s32.totalorder %v3979_v59, %v1681_v41  ;;  %v1456_v41 = vsub.f32 %v3914_v26, %v4032_v44 }
0x1056   :  { %v4084_v43 = vsel %vm1682_vm6, 1.0, %v3546_v0  ;;  %v1763_v45 = vsel %vm1682_vm6, -inf, %v1661_v20  ;;  %vm2077_vm6 = vcmask 39936  }
0x1057   :  { %3338 = vmatmul.mubr.msk.f32.vlgmr.msra.gmra.mxu0 %vm291_vm2, %v4084_v43  ;;  %v1764_v46 = vsel %vm291_vm2, %v1763_v45, -inf }
0x1058   :  { %3352 = vmatpush3.msra.mxu0 %v3919_v36  ;;  %1765 = vmax.xlane.f32.xlu0 %v1764_v46 }
0x1059   :  { %3353 = vmatprep.subr.mxu0 %v3546_v0  ;;  %3359 = vmatprep.mubr.msk.f32.mxu0 %vm3548_vm0, %v3546_v0 }
0x105a   :  { %3354 = vmatpush3.msra.mxu0 %v3921_v38 }
0x105b   :  { %3355 = vmatprep.subr.mxu0 %v3546_v0 }
0x105c   :  { %3356 = vmatpush3.msra.mxu0 %v3930_v40 }
0x105d   :  { %3357 = vmatprep.subr.mxu0 %v3546_v0 }
0x105e   :  { %3358 = vmatpush3.msra.mxu0 %v3939_v42 }
0x10e1   :  { %v4098_v47 = vpop.xlane.xlu0 %1765 }
0x10e2   :  { %vm1767_vm7 = vcmp.eq.f32.partialorder %v1763_v45, %v4098_v47 }
0x10e3   :  { %v1768_v48 = vsel %vm1767_vm7, %v3979_v59, 32  ;;  %vm2079_vm7 = vcmask 48128  }
0x10e4   :  { %v1769_v49 = vsel %vm291_vm2, %v1768_v48, 2147483647 }
0x10e5   :  { %v1771_v50 = vshra.s32 %v1769_v49, 16  ;;  %v1770_v54 = vand.u32 65535, %v1769_v49 }
0x10e7   :  { %v1773_v51 = vcvt.s32.f32 %v1771_v50  ;;  %v1772_v57 = vcvt.s32.f32 %v1770_v54 }
0x10e9   :  { %1774 = vmin.xlane.f32.xlu1 %v1773_v51 }
0x1117   :  { %v4103_v52 = vpop.f32.mrf.mxu0 }
0x1118   :  { %v1762_v46 = vsub.f32 %v3914_v26, %v4103_v52 }
0x1119   :  { %v3339_v53 = vpop.f32.mrf.mxu0 }
0x1172   :  { %v1775_v56 = vpop.xlane.xlu1 %1774 }
0x1173   :  { %vm1776_vm8 = vcmp.eq.f32.partialorder %v1773_v51, %v1775_v56  ;;  %v1781_v1 = vcvt.f32.s32 %v1775_v56 }
0x1174   :  { %v1777_v63 = vsel %vm1776_vm8, %v1772_v57, inf  ;;  %vm2081_vm8 = vcmask 56320   ;;  %v4164_v57 = vld [vmem:[%s2830_s21] ss:$0 sm:$0xff]  ;;  %s2862_s21 = sld [smem:[%s4322_s0 + %s3590_s18]]  }
0x1175   :  { %1778 = vmin.xlane.f32.xlu0 %v1777_v63  ;;  %v1782_v4 = vshll.u32 %v1781_v1, 16  ;;  %v1350_v63 = vmul.f32 %v4164_v57, %v3988_v15  ;;  %v1758_v1 = vmul.f32 %v4084_v43, %v4164_v57 }
0x11fe   :  { %v1779_v3 = vpop.xlane.xlu0 %1778 }
0x11ff   :  { %v1780_v6 = vcvt.f32.s32 %v1779_v3  ;;  %v1759_v3 = vsel %vm291_vm2, %v1758_v1, 0.0 }
0x1201   :  { %v1783_v8 = vadd.s32 %v1782_v4, %v1780_v6  ;;  %v3568_v6 = vmov 0  }
0x1202   :  { %3507 = vset.pattern.permute.xlu1 %v3568_v6  ;;  %3508 = vset.pattern.permute.xlu0 %v3568_v6 }
0x1203   :  { %vm1784_vm9 = vcmp.eq.s32.totalorder %v3979_v59, %v1783_v8 }
0x1204   :  { %v4107_v9 = vsel %vm1784_vm9, 1.0, %v3546_v0  ;;  %v1865_v10 = vsel %vm1784_vm9, -inf, %v1763_v45  ;;  %v1660_v45 = vsub.f32 %v3914_v26, %v4080_v27  ;;  %v2070_v27 = vsel %vm2069_vm13, %v3981_v62, %v4003_v2 }
0x1205   :  { %3349 = vmatmul.mubr.msk.f32.vlgmr.msra.gmra.mxu1 %vm291_vm2, %v4107_v9  ;;  %v1866_v11 = vsel %vm291_vm2, %v1865_v10, -inf  ;;  %v2072_v49 = vsel %vm2071_vm14, %v2070_v27, %v4027_v35  ;;  %v2304_v27 = vld [vmem:[%s4185_s25 + $0x18] sm:$0xff] }
0x1206   :  { %3363 = vmatpush3.msra.mxu1 %v3919_v36  ;;  %1867 = vmax.xlane.f32.xlu1 %v1866_v11  ;;  %v2074_v51 = vsel %vm2073_vm15, %v2072_v49, %v4051_v58  ;;  %v1351_v58 = vsel %vm291_vm2, %v1350_v63, 0.0 }
0x1207   :  { %3364 = vmatprep.subr.mxu1 %v3546_v0  ;;  %3370 = vmatprep.mubr.msk.f32.mxu1 %vm3548_vm0, %v3546_v0  ;;  %v2076_v53 = vsel %vm2075_vm5, %v2074_v51, %v4075_v7  ;;  %v1554_v7 = vmul.f32 %v4036_v55, %v4164_v57 }
0x1208   :  { %3365 = vmatpush3.msra.mxu1 %v3921_v38  ;;  %v2078_v54 = vsel %vm2077_vm6, %v2076_v53, %v4098_v47  ;;  %v2301_v53 = vld [vmem:[%s4185_s25] sm:$0xff] }
0x1209   :  { %3366 = vmatprep.subr.mxu1 %v3546_v0  ;;  %v1555_v47 = vsel %vm291_vm2, %v1554_v7, 0.0 }
0x120a   :  { %3367 = vmatpush3.msra.mxu1 %v3930_v40 }
0x120b   :  { %3368 = vmatprep.subr.mxu1 %v3546_v0 }
0x120c   :  { %3369 = vmatpush3.msra.mxu1 %v3939_v42  ;;  %v2156_v42 = vld [vmem:[%s2849_s17 + $0x18] sm:$0xff]  ;;  %s2859_s17 = sld [smem:[%s4322_s0 + %s3589_s14]]  }
0x120d   :  { %3373 = vmatprep.subr.mxu0 %v2156_v42 }
0x128f   :  { %v4121_v60 = vpop.xlane.xlu1 %1867 }
0x1290   :  { %vm1869_vm10 = vcmp.eq.f32.partialorder %v1865_v10, %v4121_v60  ;;  %v2080_v62 = vsel %vm2079_vm7, %v2078_v54, %v4121_v60 }
0x1291   :  { %v1870_v36 = vsel %vm1869_vm10, %v3979_v59, 32 }
0x1292   :  { %v1871_v13 = vsel %vm291_vm2, %v1870_v36, 2147483647 }
0x1293   :  { %v1873_v14 = vshra.s32 %v1871_v13, 16  ;;  %v1872_v20 = vand.u32 65535, %v1871_v13 }
0x1295   :  { %v1875_v16 = vcvt.s32.f32 %v1873_v14  ;;  %v1874_v40 = vcvt.s32.f32 %v1872_v20  ;;  %v2308_v20 = vld [vmem:[%s4185_s25 + $0x38] sm:$0xff] }
0x1296   :  { %3393 = vmatprep.subr.mxu1 %v2308_v20 }
0x1297   :  { %1876 = vmin.xlane.f32.xlu0 %v1875_v16 }
0x12c5   :  { %v1856_v38 = vpop.f32.mrf.mxu1 }
0x12c6   :  { %v1864_v44 = vsub.f32 %v3914_v26, %v1856_v38 }
0x12c7   :  { %v3350_v18 = vpop.f32.mrf.mxu1 }
0x1320   :  { %v1877_v22 = vpop.xlane.xlu0 %1876 }
0x1321   :  { %vm1878_vm11 = vcmp.eq.f32.partialorder %v1875_v16, %v1877_v22  ;;  %v1883_v24 = vcvt.f32.s32 %v1877_v22 }
0x1322   :  { %v1879_v23 = vsel %vm1878_vm11, %v1874_v40, inf }
0x1323   :  { %1880 = vmin.xlane.f32.xlu1 %v1879_v23  ;;  %v1884_v12 = vshll.u32 %v1883_v24, 16  ;;  %v1452_v23 = vmul.f32 %v4012_v32, %v4164_v57  ;;  %v1656_v24 = vmul.f32 %v4060_v19, %v4164_v57 }
0x13ac   :  { %v1881_v25 = vpop.xlane.xlu1 %1880 }
0x13ad   :  { %v1882_v28 = vcvt.f32.s32 %v1881_v25  ;;  %v1657_v25 = vsel %vm291_vm2, %v1656_v24, 0.0 }
0x13af   :  { %v1885_v17 = vadd.s32 %v1884_v12, %v1882_v28  ;;  %v1860_v12 = vmul.f32 %v4107_v9, %v4164_v57 }
0x13b1   :  { %vm1886_vm12 = vcmp.eq.s32.totalorder %v3979_v59, %v1885_v17  ;;  %v1861_v28 = vsel %vm291_vm2, %v1860_v12, 0.0 }
0x13b2   :  { %v2926_v29 = vsel %vm1886_vm12, 1.0, %v3546_v0  ;;  %v1967_v30 = vsel %vm1886_vm12, -inf, %v1865_v10 }
0x13b3   :  { %3360 = vmatmul.mubr.msk.f32.vlgmr.msra.gmra.mxu0 %vm291_vm2, %v2926_v29  ;;  %v1968_v34 = vsel %vm291_vm2, %v1967_v30, -inf  ;;  %v1962_v4 = vmul.f32 %v2926_v29, %v4164_v57 }
0x13b4   :  { %3374 = vmatpush3.msra.mxu0 %v2156_v42  ;;  %1969 = vmax.xlane.f32.xlu0 %v1968_v34  ;;  %v1453_v42 = vsel %vm291_vm2, %v1452_v23, 0.0 }
0x13b5   :  { %3375 = vmatprep.subr.mxu0 %v2155_v31  ;;  %3381 = vmatprep.mubr.msk.f32.mxu0 %vm291_vm2, %v1354_v33  ;;  %v1963_v15 = vsel %vm291_vm2, %v1962_v4, 0.0 }
0x13b6   :  { %3376 = vmatpush3.msra.mxu0 %v2155_v31 }
0x13b7   :  { %3377 = vmatprep.subr.mxu0 %v2154_v37 }
0x13b8   :  { %3378 = vmatpush3.msra.mxu0 %v2154_v37 }
0x13b9   :  { %3379 = vmatprep.subr.mxu0 %v2153_v39 }
0x13ba   :  { %3380 = vmatpush3.msra.mxu0 %v2153_v39 }
0x13bb   :  { %3382 = vmatmul.mubr.msk.f32.vlgmr.msra.gmra.mxu0 %vm291_vm2, %v1456_v41  ;;  %3421 = vmatprep.subr.mxu0 %v3546_v0  ;;  %v2307_v41 = vld [vmem:[%s4185_s25 + $0x30] sm:$0xff] }
0x13bc   :  { %3384 = vmatprep.mubr.msk.f32.mxu0 %vm291_vm2, %v1558_v21 }
0x13bf   :  { %3385 = vmatmul.mubr.msk.f32.gmra.mxu0 %vm291_vm2, %v1660_v45 }
0x13c0   :  { %3387 = vmatprep.mubr.msk.f32.mxu0 %vm291_vm2, %v1762_v46  ;;  %v2306_v46 = vld [vmem:[%s4185_s25 + $0x28] sm:$0xff] }
0x13c3   :  { %3388 = vmatmul.mubr.msk.f32.gmra.mxu0 %vm291_vm2, %v1864_v44 }
0x143d   :  { %v1970_v5 = vpop.xlane.xlu0 %1969 }
0x143e   :  { %vm1971_vm4 = vcmp.eq.f32.partialorder %v1967_v30, %v1970_v5  ;;  %v2082_v2 = vsel %vm2081_vm8, %v2080_v62, %v1970_v5  ;;  %v4204_v30 = vld [vmem:[%s2850_s29] ss:$0 sm:$0xff] }
0x143f   :  { %v1972_v48 = vsel %vm1971_vm4, %v3979_v59, 32  ;;  %v2446_v35 = vsel %vm165_vm1, %v2082_v2, -inf }
0x1440   :  { %v1973_v50 = vsel %vm291_vm2, %v1972_v48, 2147483647  ;;  %v2303_v48 = vld [vmem:[%s4185_s25 + $0x10] sm:$0xff] }
0x1441   :  { %v1975_v52 = vshra.s32 %v1973_v50, 16  ;;  %v1974_v43 = vand.u32 65535, %v1973_v50  ;;  %v2302_v50 = vld [vmem:[%s4185_s25 + $0x8] sm:$0xff] }
0x1443   :  { %v1977_v56 = vcvt.s32.f32 %v1975_v52  ;;  %v1976_v60 = vcvt.s32.f32 %v1974_v43 }
0x1445   :  { %1978 = vmin.xlane.f32.xlu1 %v1977_v56 }
0x1449   :  { %2447 = vmax.xlane.f32.xlu1 %v2446_v35 }
0x144d   :  { %1352 = vadd.xlane.f32.xlu1 %v1351_v58 }
0x1451   :  { %1556 = vadd.xlane.f32.xlu1 %v1555_v47 }
0x1455   :  { %1760 = vadd.xlane.f32.xlu1 %v1759_v3 }
0x1459   :  { %1964 = vadd.xlane.f32.xlu1 %v1963_v15 }
0x1473   :  { %v1958_v55 = vpop.f32.mrf.mxu0 }
0x1474   :  { %v1966_v8 = vsub.f32 %v3914_v26, %v1958_v55 }
0x1475   :  { %v3361_v10 = vpop.f32.mrf.mxu0 }
0x1476   :  { %3390 = vmatprep.mubr.msk.f32.mxu0 %vm291_vm2, %v1966_v8  ;;  %v3571_v8 = vmov 3  }
0x147b   :  { %v3383_v32 = vpop.f32.mrf.mxu0 }
0x147c   :  { %v2260_v51 = vadd.f32 %v3383_v32, %v4204_v30 }
0x147d   :  { %v2254_v29 = vpop.f32.mrf.mxu0 }
0x147e   :  { %v2255_v9 = vadd.f32 %v4204_v30, %v2254_v29 }
0x147f   :  { %v3386_v21 = vpop.f32.mrf.mxu0 }
0x1480   :  { %v2293_v37 = vmax.f32 %v2255_v9, 0.0  ;;  %v2270_v62 = vadd.f32 %v3386_v21, %v4204_v30 }
0x1481   :  { %v2264_v5 = vpop.f32.mrf.mxu0 }
0x1482   :  { %v2265_v52 = vadd.f32 %v4204_v30, %v2264_v5  ;;  %v2296_v63 = vmax.f32 %v2270_v62, 0.0 }
0x1483   :  { %v3389_v49 = vpop.f32.mrf.mxu0 }
0x1484   :  { %v2280_v58 = vadd.f32 %v3389_v49, %v4204_v30 }
0x1485   :  { %v2274_v54 = vpop.f32.mrf.mxu0 }
0x1486   :  { %v2275_v35 = vadd.f32 %v4204_v30, %v2274_v54  ;;  %v2298_v1 = vmax.f32 %v2280_v58, 0.0 }
0x1488   :  { %v2297_v47 = vmax.f32 %v2275_v35, 0.0 }
0x14ce   :  { %v1979_v11 = vpop.xlane.xlu1 %1978 }
0x14cf   :  { %vm1980_vm9 = vcmp.eq.f32.partialorder %v1977_v56, %v1979_v11  ;;  %v1985_v17 = vcvt.f32.s32 %v1979_v11  ;;  %v2294_v56 = vmax.f32 %v2260_v51, 0.0  ;;  %v3572_v11 = vmov 5  }
0x14d0   :  { %v1981_v36 = vsel %vm1980_vm9, %v1976_v60, inf  ;;  %v3573_v60 = vmov 7  }
0x14d1   :  { %1982 = vmin.xlane.f32.xlu0 %v1981_v36  ;;  %v1986_v31 = vshll.u32 %v1985_v17, 16  ;;  %v3574_v36 = vmov 1  }
0x14d2   :  { %v2448_v13 = vpop.xlane.xlu1 %2447 }
0x14d3   :  { %v2449_v14 = vsub.f32 %v2082_v2, %v2448_v13  ;;  %v3575_v13 = vmov 2  }
0x14d5   :  { %v2450_v16 = vmul.f32 1.442695, %v2449_v14  ;;  %v3576_v14 = vmov 4  }
0x14d6   :  { %v1353_v38 = vpop.xlane.xlu1 %1352 }
0x14d7   :  { %3538 = vpow2.f32 %v2450_v16  ;;  %2086 = vperm.xlu1 %3507, %v1353_v38   ;;  %v3577_v38 = vmov 6  }
0x14da   :  { %v1557_v18 = vpop.xlane.xlu1 %1556 }
0x14db   :  { %2096 = vperm.xlu1 %3507, %v1557_v18  }
0x14de   :  { %v1761_v4 = vpop.xlane.xlu1 %1760 }
0x14e2   :  { %v1965_v43 = vpop.xlane.xlu1 %1964 }
0x14e4   :  { %v4188_v22 = vpop.eup %3538 }
0x14e5   :  { %v2452_v40 = vsel %vm165_vm1, %v4188_v22, 0.0 }
0x14e6   :  { %2453 = vadd.xlane.f32.xlu0 %v2452_v40 }
0x14ea   :  { %1454 = vadd.xlane.f32.xlu0 %v1453_v42 }
0x14ee   :  { %1658 = vadd.xlane.f32.xlu0 %v1657_v25 }
0x14f2   :  { %1862 = vadd.xlane.f32.xlu0 %v1861_v28 }
0x155a   :  { %v1983_v19 = vpop.xlane.xlu0 %1982 }
0x155b   :  { %v1984_v33 = vcvt.f32.s32 %v1983_v19 }
0x155d   :  { %v1987_v34 = vadd.s32 %v1986_v31, %v1984_v33  ;;  %v2930_v31 = vld [vmem:[%s2847_s3] ss:$0 sm:$0xff] }
0x155f   :  { %vm1988_vm1 = vcmp.eq.s32.totalorder %v3979_v59, %v1987_v34  ;;  %v2305_v59 = vld [vmem:[%s4185_s25 + $0x20] sm:$0xff] }
0x1560   :  { %v2928_v39 = vsel %vm1988_vm1, 1.0, %v3546_v0 }
0x1561   :  { %3371 = vmatmul.mubr.msk.f32.vlgmr.msra.gmra.mxu1 %vm291_vm2, %v2928_v39  ;;  %v2064_v45 = vmul.f32 %v2928_v39, %v4164_v57  ;;  %v2295_v57 = vmax.f32 %v2265_v52, 0.0  ;;  %v2931_v39 = vld [vmem:[%s2848_s7] ss:$0 sm:$0xff] }
0x1562   :  { %3394 = vmatpush3.msra.mxu1 %v2308_v20  ;;  %3409 = vmatprep.mubr.msk.f32.mxu1 %vm408_vm3, %v2293_v37 }
0x1563   :  { %3395 = vmatprep.subr.mxu1 %v2307_v41  ;;  %v2065_v44 = vsel %vm291_vm2, %v2064_v45, 0.0 }
0x1564   :  { %3396 = vmatpush3.msra.mxu1 %v2307_v41  ;;  %2066 = vadd.xlane.f32.xlu0 %v2065_v44 }
0x1565   :  { %3397 = vmatprep.subr.mxu1 %v2306_v46 }
0x1566   :  { %3398 = vmatpush3.msra.mxu1 %v2306_v46 }
0x1567   :  { %3399 = vmatprep.subr.mxu1 %v2305_v59 }
0x1568   :  { %3400 = vmatpush3.msra.mxu1 %v2305_v59 }
0x1569   :  { %3401 = vmatprep.subr.mxu1 %v2304_v27 }
0x156a   :  { %3402 = vmatpush3.msra.mxu1 %v2304_v27 }
0x156b   :  { %3403 = vmatprep.subr.mxu1 %v2303_v48 }
0x156c   :  { %3404 = vmatpush3.msra.mxu1 %v2303_v48 }
0x156d   :  { %3405 = vmatprep.subr.mxu1 %v2302_v50 }
0x156e   :  { %3406 = vmatpush3.msra.mxu1 %v2302_v50 }
0x156f   :  { %3407 = vmatprep.subr.mxu1 %v2301_v53  ;;  %v2454_v2 = vpop.xlane.xlu0 %2453 }
0x1570   :  { %3540 = vrcp.f32 %v2454_v2  ;;  %3408 = vmatpush3.msra.mxu1 %v2301_v53 }
0x1571   :  { %3410 = vmatmul.mubr.msk.f32.vlgmr.msra.gmra.mxu1 %vm408_vm3, %v2294_v56  ;;  %3432 = vmatprep.subr.mxu1 %v3546_v0 }
0x1572   :  { %3412 = vmatprep.mubr.msk.f32.mxu1 %vm408_vm3, %v2295_v57 }
0x1573   :  { %v1455_v7 = vpop.xlane.xlu0 %1454 }
0x1575   :  { %3413 = vmatmul.mubr.msk.f32.gmra.mxu1 %vm408_vm3, %v2296_v63 }
0x1576   :  { %3415 = vmatprep.mubr.msk.f32.mxu1 %vm408_vm3, %v2297_v47 }
0x1577   :  { %v1659_v3 = vpop.xlane.xlu0 %1658 }
0x1578   :  { %2101 = vperm.xlu1 %3507, %v1659_v3  }
0x1579   :  { %3416 = vmatmul.mubr.msk.f32.gmra.mxu1 %vm408_vm3, %v2298_v1 }
0x157a   :  { %2091 = vperm.xlu0 %3508, %v1455_v7  }
0x157b   :  { %v1863_v10 = vpop.xlane.xlu0 %1862 }
0x157c   :  { %2106 = vperm.xlu1 %3507, %v1761_v4  }
0x157d   :  { %v3541_v15 = vpop.eup %3540 }
0x157e   :  { %v2456_v55 = vmul.f32 %v3541_v15, %v4188_v22  ;;  %3511 = vset.pattern.permute.xlu0 %v3571_v8 }
0x1580   :  { %2477 = vperm.xlu0 %3511, %v2456_v55   ;;  %2111 = vperm.xlu1 %3507, %v1863_v10  }
0x1584   :  { %3513 = vset.pattern.permute.xlu0 %v3572_v11  ;;  %2116 = vperm.xlu1 %3507, %v1965_v43  }
0x1585   :  { %2489 = vperm.xlu0 %3513, %v2456_v55  }
0x1588   :  { %2459 = vperm.xlu1 %3507, %v2456_v55  }
0x1589   :  { %3517 = vset.pattern.permute.xlu0 %v3573_v60 }
0x158c   :  { %3509 = vset.pattern.permute.xlu1 %v3574_v36 }
0x158d   :  { %2465 = vperm.xlu1 %3509, %v2456_v55  }
0x1591   :  { %3510 = vset.pattern.permute.xlu1 %v3575_v13 }
0x1592   :  { %2471 = vperm.xlu1 %3510, %v2456_v55  }
0x1596   :  { %3512 = vset.pattern.permute.xlu1 %v3576_v14 }
0x1597   :  { %2483 = vperm.xlu1 %3512, %v2456_v55  }
0x159b   :  { %3514 = vset.pattern.permute.xlu1 %v3568_v6 }
0x15ed   :  { %v2067_v16 = vpop.xlane.xlu0 %2066 }
0x15ee   :  { %2121 = vperm.xlu1 %3514, %v2067_v16  }
0x15f2   :  { %3515 = vset.pattern.permute.xlu1 %v3577_v38 }
0x15f3   :  { %2495 = vperm.xlu1 %3515, %v2456_v55  }
0x15f5   :  { %v2092_v9 = vpop.permute.xlu0 %2091 }
0x15f6   :  { %v2131_v45 = vmul.f32 %v2930_v31, %v2092_v9  ;;  %v2512_v9 = vld [vmem:[%s2854_s11 + $0x18] sm:$0xff] }
0x15f7   :  { %3516 = vset.pattern.permute.xlu1 %v3573_v60  ;;  %3422 = vmatpush3.msra.mxu0 %v2512_v9 }
0x15f8   :  { %2501 = vperm.xlu1 %3516, %v2456_v55   ;;  %v2146_v59 = vadd.f32 %v2931_v39, %v2131_v45  ;;  %3423 = vmatprep.subr.mxu0 %v3546_v0  ;;  %v2518_v45 = vld [vmem:[%s4265_s15 + $0x20] sm:$0xff] }
0x15fb   :  { %v2478_v4 = vpop.permute.xlu0 %2477 }
0x1621   :  { %v2060_v18 = vpop.f32.mrf.mxu1 }
0x1622   :  { %v2068_v20 = vsub.f32 %v3914_v26, %v2060_v18  ;;  %v2087_v26 = vpop.permute.xlu1 %2086 }
0x1623   :  { %v3372_v22 = vpop.f32.mrf.mxu1  ;;  %v2130_v34 = vmul.f32 %v2930_v31, %v2087_v26 }
0x1624   :  { %3391 = vmatmul.mubr.msk.f32.gmra.mxu0 %vm291_vm2, %v2068_v20  ;;  %v2490_v20 = vpop.permute.xlu0 %2489 }
0x1625   :  { %3429 = vmatprep.mubr.msk.f32.mxu0 %vm3548_vm0, %v3546_v0  ;;  %v2145_v46 = vadd.f32 %v2931_v39, %v2130_v34  ;;  %v2510_v34 = vld [vmem:[%s2854_s11 + $0x8] sm:$0xff] }
0x1626   :  { %v2097_v12 = vpop.permute.xlu1 %2096 }
0x1627   :  { %v2132_v21 = vmul.f32 %v2930_v31, %v2097_v12 }
0x1629   :  { %v2147_v27 = vadd.f32 %v2931_v39, %v2132_v21  ;;  %v2519_v21 = vld [vmem:[%s4265_s15 + $0x28] sm:$0xff] }
0x162a   :  { %v2102_v28 = vpop.permute.xlu1 %2101 }
0x162b   :  { %v2133_v49 = vmul.f32 %v2930_v31, %v2102_v28 }
0x162d   :  { %v2148_v62 = vadd.f32 %v2931_v39, %v2133_v49 }
0x162e   :  { %v2107_v32 = vpop.permute.xlu1 %2106 }
0x162f   :  { %v2134_v53 = vmul.f32 %v2930_v31, %v2107_v32 }
0x1631   :  { %v3411_v19 = vpop.f32.mrf.mxu1  ;;  %v2149_v7 = vadd.f32 %v2931_v39, %v2134_v53  ;;  %v2516_v53 = vld [vmem:[%s4265_s15 + $0x10] sm:$0xff] }
0x1632   :  { %v2112_v17 = vpop.permute.xlu1 %2111  ;;  %v2439_v50 = vadd.f32 %v3411_v19, %v2146_v59 }
0x1633   :  { %v2399_v33 = vpop.f32.mrf.mxu1  ;;  %v2135_v47 = vmul.f32 %v2930_v31, %v2112_v17 }
0x1634   :  { %v2438_v5 = vadd.f32 %v2399_v33, %v2145_v46  ;;  %v2517_v46 = vld [vmem:[%s4265_s15 + $0x18] sm:$0xff] }
0x1635   :  { %v3414_v41 = vpop.f32.mrf.mxu1  ;;  %v2150_v8 = vadd.f32 %v2931_v39, %v2135_v47 }
0x1636   :  { %v2117_v29 = vpop.permute.xlu1 %2116  ;;  %v2441_v58 = vadd.f32 %v3414_v41, %v2148_v62  ;;  %v2520_v41 = vld [vmem:[%s4265_s15 + $0x30] sm:$0xff]  ;;  %v2951_v62 = vld [vmem:[%s2855_s27] ss:$0 sm:$0xff] }
0x1637   :  { %v2409_v44 = vpop.f32.mrf.mxu1  ;;  %v2136_v10 = vmul.f32 %v2930_v31, %v2117_v29 }
0x1638   :  { %v2440_v51 = vadd.f32 %v2409_v44, %v2147_v27  ;;  %v2480_v55 = vmul.f32 %v2478_v4, %v2441_v58  ;;  %v2953_v58 = vld [vmem:[%s2857_s1] ss:$0 sm:$0xff] }
0x1639   :  { %v3417_v52 = vpop.f32.mrf.mxu1  ;;  %v2151_v18 = vadd.f32 %v2931_v39, %v2136_v10 }
0x163a   :  { %v2443_v36 = vadd.f32 %v3417_v52, %v2150_v8 }
0x163b   :  { %v2419_v35 = vpop.f32.mrf.mxu1 }
0x163c   :  { %v2442_v3 = vadd.f32 %v2419_v35, %v2149_v7 }
0x16e4   :  { %v3392_v40 = vpop.f32.mrf.mxu0 }
0x16e5   :  { %v2290_v23 = vadd.f32 %v3392_v40, %v4204_v30  ;;  %v2492_v40 = vmul.f32 %v2490_v20, %v2443_v36  ;;  %v2741_v36 = vld [vmem:[%s2860_s5 + $0x8] sm:$0xff]  ;;  %v2955_v20 = vld [vmem:[%s2858_s13] ss:$0 sm:$0xff] }
0x16e6   :  { %v2284_v6 = vpop.f32.mrf.mxu0 }
0x16e7   :  { %v2285_v42 = vadd.f32 %v4204_v30, %v2284_v6  ;;  %v2300_v25 = vmax.f32 %v2290_v23, 0.0  ;;  %v2460_v30 = vpop.permute.xlu1 %2459 }
0x16e8   :  { %v2462_v54 = vmul.f32 %v2460_v30, %v2438_v5 }
0x16e9   :  { %v2299_v24 = vmax.f32 %v2285_v42, 0.0 }
0x16eb   :  { %3418 = vmatprep.mubr.msk.f32.mxu1 %vm408_vm3, %v2299_v24  ;;  %v2466_v37 = vpop.permute.xlu1 %2465 }
0x16ec   :  { %3419 = vmatmul.mubr.msk.f32.gmra.mxu1 %vm408_vm3, %v2300_v25  ;;  %v2468_v56 = vmul.f32 %v2466_v37, %v2439_v50  ;;  %v2509_v37 = vld [vmem:[%s2854_s11] sm:$0xff] }
0x16ed   :  { %3448 = vmatprep.mubr.msk.f32.mxu1 %vm3548_vm0, %v3546_v0  ;;  %v2950_v50 = vld [vmem:[%s2853_s23] ss:$0 sm:$0xff] }
0x16ee   :  { %v2469_v63 = vadd.f32 %v2468_v56, %v2462_v54  ;;  %v2515_v54 = vld [vmem:[%s4265_s15 + $0x8] sm:$0xff]  ;;  %v2514_v56 = vld [vmem:[%s4265_s15] sm:$0xff] }
0x16ef   :  { %v2472_v48 = vpop.permute.xlu1 %2471 }
0x16f0   :  { %v2474_v2 = vmul.f32 %v2472_v48, %v2440_v51  ;;  %v2949_v48 = vld [vmem:[%s2852_s19] ss:$0 sm:$0xff] }
0x16f2   :  { %v2475_v1 = vadd.f32 %v2474_v2, %v2469_v63 }
0x16f3   :  { %v2484_v57 = vpop.permute.xlu1 %2483 }
0x16f4   :  { %v2481_v43 = vadd.f32 %v2480_v55, %v2475_v1  ;;  %v2486_v11 = vmul.f32 %v2484_v57, %v2442_v3 }
0x16f6   :  { %v2487_v16 = vadd.f32 %v2486_v11, %v2481_v43  ;;  %v2743_v11 = vld [vmem:[%s2860_s5 + $0x18] sm:$0xff] }
0x16f7   :  { %v2122_v15 = vpop.permute.xlu1 %2121 }
0x16f8   :  { %v2137_v60 = vmul.f32 %v2930_v31, %v2122_v15  ;;  %v2493_v42 = vadd.f32 %v2492_v40, %v2487_v16  ;;  %v2956_v40 = vld [vmem:[%s2859_s17] ss:$0 sm:$0xff] }
0x16fa   :  { %v2152_v38 = vadd.f32 %v2931_v39, %v2137_v60  ;;  %v2521_v39 = vld [vmem:[%s4265_s15 + $0x38] sm:$0xff]  ;;  %v2742_v60 = vld [vmem:[%s2860_s5 + $0x10] sm:$0xff] }
0x16fb   :  { %v2496_v13 = vpop.permute.xlu1 %2495  ;;  %3433 = vmatpush3.msra.mxu1 %v2521_v39 }
0x16fc   :  { %3434 = vmatprep.subr.mxu1 %v3546_v0 }
0x16fd   :  { %3435 = vmatpush3.msra.mxu1 %v2520_v41 }
0x16fe   :  { %3436 = vmatprep.subr.mxu1 %v3546_v0 }
0x16ff   :  { %v2502_v25 = vpop.permute.xlu1 %2501  ;;  %3437 = vmatpush3.msra.mxu1 %v2519_v21 }
0x1700   :  { %3438 = vmatprep.subr.mxu1 %v3546_v0 }
0x1701   :  { %3439 = vmatpush3.msra.mxu1 %v2518_v45 }
0x1702   :  { %3440 = vmatprep.subr.mxu1 %v3546_v0 }
0x1703   :  { %3441 = vmatpush3.msra.mxu1 %v2517_v46 }
0x1704   :  { %3442 = vmatprep.subr.mxu1 %v3546_v0 }
0x1705   :  { %3443 = vmatpush3.msra.mxu1 %v2516_v53 }
0x1706   :  { %3444 = vmatprep.subr.mxu1 %v3546_v0 }
0x1707   :  { %3445 = vmatpush3.msra.mxu1 %v2515_v54 }
0x1708   :  { %3446 = vmatprep.subr.mxu1 %v3546_v0 }
0x1709   :  { %3447 = vmatpush3.msra.mxu1 %v2514_v56 }
0x17ac   :  { %v3420_v14 = vpop.f32.mrf.mxu1 }
0x17ad   :  { %v2445_v23 = vadd.f32 %v3420_v14, %v2152_v38  ;;  %v78_v14 = vstv %s2861_s9 }
0x17ae   :  { %v2429_v22 = vpop.f32.mrf.mxu1  ;;  %79 = vst [vmem:[#allocation2] sm:$0x1] %v78_v14 }
0x17af   :  { %v2444_v6 = vadd.f32 %v2429_v22, %v2151_v18  ;;  %v2504_v26 = vmul.f32 %v2502_v25, %v2445_v23 }
0x17b1   :  { %v2498_v24 = vmul.f32 %v2496_v13, %v2444_v6  ;;  %v2740_v13 = vld [vmem:[%s2860_s5] sm:$0xff] }
0x17b3   :  { %v2499_v12 = vadd.f32 %v2498_v24, %v2493_v42 }
0x17b5   :  { %v2505_v28 = vadd.f32 %v2504_v26, %v2499_v12  ;;  %v2957_v24 = vld [vmem:[#allocation2] ss:$0 sm:$0xff] }
0x17b7   :  { %v4250_v32 = vadd.f32 %v2505_v28, %v3840_v61  ;;  %v2511_v61 = vld [vmem:[%s2854_s11 + $0x10] sm:$0xff] }
0x17b8   :  { %3424 = vmatpush3.msra.mxu0 %v2511_v61 }
0x17b9   :  { %v2523_v17 = vsel %vm291_vm2, %v4250_v32, 0.0  ;;  %3425 = vmatprep.subr.mxu0 %v3546_v0 }
0x17ba   :  { %2524 = vadd.xlane.f32.xlu0 %v2523_v17  ;;  %3426 = vmatpush3.msra.mxu0 %v2510_v34 }
0x17bb   :  { %3427 = vmatprep.subr.mxu0 %v3546_v0 }
0x17bc   :  { %3428 = vmatpush3.msra.mxu0 %v2509_v37 }
0x17bd   :  { %3451 = vmatprep.subr.mxu0 %v3546_v0 }
0x1843   :  { %v2525_v29 = vpop.xlane.xlu0 %2524 }
0x1844   :  { %v2526_v19 = vmul.f32 0.03125, %v2525_v29 }
0x1846   :  { %v2527_v30 = vsub.f32 %v4250_v32, %v2526_v19 }
0x1848   :  { %v2528_v31 = vmul.f32 %v2527_v30, %v2527_v30 }
0x184a   :  { %v2529_v33 = vsel %vm291_vm2, %v2528_v31, 0.0 }
0x184b   :  { %2530 = vadd.xlane.f32.xlu1 %v2529_v33 }
0x18d4   :  { %v2531_v44 = vpop.xlane.xlu1 %2530 }
0x18d5   :  { %v2532_v59 = vmul.f32 0.03125, %v2531_v44 }
0x18d7   :  { %v2533_v5 = vadd.f32 1e-05, %v2532_v59 }
0x18d9   :  { %3542 = vrsqrt.f32 %v2533_v5 }
0x18e6   :  { %v3543_v27 = vpop.eup %3542 }
0x18e7   :  { %v2535_v49 = vmul.f32 %v3543_v27, %v2527_v30 }
0x18e9   :  { %v2542_v51 = vmul.f32 %v2949_v48, %v2535_v49 }
0x18eb   :  { %v2549_v52 = vadd.f32 %v2950_v50, %v2542_v51 }
0x18ed   :  { %3430 = vmatmul.mubr.msk.f32.vlgmr.msra.gmra.mxu0 %vm291_vm2, %v2549_v52 }
0x18ee   :  { %3459 = vmatprep.mubr.msk.f32.mxu0 %vm3548_vm0, %v3546_v0  ;;  %3452 = vmatpush3.msra.mxu0 %v2743_v11 }
0x18ef   :  { %3453 = vmatprep.subr.mxu0 %v3546_v0 }
0x18f0   :  { %3454 = vmatpush3.msra.mxu0 %v2742_v60 }
0x18f1   :  { %3455 = vmatprep.subr.mxu0 %v3546_v0 }
0x18f2   :  { %3456 = vmatpush3.msra.mxu0 %v2741_v36 }
0x18f3   :  { %3457 = vmatprep.subr.mxu0 %v3546_v0 }
0x18f4   :  { %3458 = vmatpush3.msra.mxu0 %v2740_v13 }
0x19ad   :  { %v2625_v2 = vpop.f32.mrf.mxu0 }
0x19ae   :  { %v2626_v57 = vadd.f32 %v2951_v62, %v2625_v2 }
0x19af   :  { %v3431_v35 = vpop.f32.mrf.mxu0 }
0x19b0   :  { %v2629_v63 = vmax.f32 %v2626_v57, 0.0 }
0x19b2   :  { %3449 = vmatmul.mubr.msk.f32.vlgmr.msra.gmra.mxu1 %vm408_vm3, %v2629_v63 }
0x1a72   :  { %v2705_v7 = vpop.f32.mrf.mxu1 }
0x1a73   :  { %v2706_v47 = vadd.f32 %v2953_v58, %v2705_v7 }
0x1a74   :  { %v3450_v1 = vpop.f32.mrf.mxu1 }
0x1a75   :  { %v2709_v3 = vadd.f32 %v2706_v47, %v4250_v32 }
0x1a77   :  { %v2712_v4 = vsel %vm291_vm2, %v2709_v3, 0.0 }
0x1a78   :  { %2713 = vadd.xlane.f32.xlu0 %v2712_v4 }
0x1b01   :  { %v2714_v15 = vpop.xlane.xlu0 %2713 }
0x1b02   :  { %v2715_v55 = vmul.f32 0.03125, %v2714_v15 }
0x1b04   :  { %v2716_v8 = vsub.f32 %v2709_v3, %v2715_v55 }
0x1b06   :  { %v2717_v10 = vmul.f32 %v2716_v8, %v2716_v8 }
0x1b08   :  { %v2718_v43 = vsel %vm291_vm2, %v2717_v10, 0.0 }
0x1b09   :  { %2719 = vadd.xlane.f32.xlu0 %v2718_v43 }
0x1b92   :  { %v2720_v16 = vpop.xlane.xlu0 %2719 }
0x1b93   :  { %v2721_v38 = vmul.f32 0.03125, %v2720_v16 }
0x1b95   :  { %v2722_v18 = vadd.f32 1e-05, %v2721_v38 }
0x1b97   :  { %3544 = vrsqrt.f32 %v2722_v18 }
0x1ba4   :  { %v3545_v0 = vpop.eup %3544 }
0x1ba5   :  { %v2724_v22 = vmul.f32 %v3545_v0, %v2716_v8 }
0x1ba7   :  { %v2731_v23 = vmul.f32 %v2955_v20, %v2724_v22 }
0x1ba9   :  { %v2738_v6 = vadd.f32 %v2956_v40, %v2731_v23 }
0x1bab   :  { %v2739_v42 = vmax.f32 %v2738_v6, 0.0 }
0x1bad   :  { %3460 = vmatmul.mubr.msk.f32.vlgmr.msra.gmra.mxu0 %vm291_vm2, %v2739_v42 }
0x1c6d   :  { %v2820_v25 = vpop.f32.mrf.mxu0 }
0x1c6e   :  { %v2821_v26 = vadd.f32 %v2957_v24, %v2820_v25 }
0x1c6f   :  { %v3461_v12 = vpop.f32.mrf.mxu0 }
0x1c70   :  { %2824 = vst.msk [vmem:[%s2862_s21] sm:$0xff] %vm2069_vm13, %v2821_v26 }

</bundles_post_ra>
